<compile_context>
chip_gen: v5e
topology: v5e:2x2
jax: 0.10.0
libtpu: 0.0.40
codegen_flags: <defaults>
</compile_context>

<pallas_src>
import functools

import jax
import jax.numpy as jnp
from jax.experimental import pallas as pl
from jax.experimental.pallas import tpu as pltpu

_LANE = 128
_SUBLANE = 8


def _round_up(x, m):
    return ((x + m - 1) // m) * m


# ----------------------------------------------------------------------------
# In-kernel helpers
# ----------------------------------------------------------------------------
def _elu(x):
    # nn.ELU(alpha=1.0): x if x > 0 else exp(x) - 1.  ELU(0) == 0, so padded
    # lanes stay exactly zero through the whole network.  Clamp the exp arg so
    # the unselected branch never overflows.
    return jnp.where(x > 0, x, jnp.exp(jnp.minimum(x, 0.0)) - 1.0)


def _run_mlp(h, wb_refs):
    """Run a stack of linear layers; ELU on all but the last."""
    n = len(wb_refs)
    for i, (w_ref, b_ref) in enumerate(wb_refs):
        h = jnp.dot(h, w_ref[...], preferred_element_type=jnp.float32) + b_ref[...]
        if i < n - 1:
            h = _elu(h)
    return h


# ----------------------------------------------------------------------------
# Kernel 1: encoder + fused (actor||critic) first layer + actor + critic
# (update_distribution + evaluate of the PyTorch module)
# ----------------------------------------------------------------------------
def _make_actor_critic_kernel(n_enc, n_a_rest, n_c_rest,
                              a0_pad, act_pad, val_pad, lat_pad):
    def kernel(*refs):
        idx = 0
        obs_ref = refs[idx]; idx += 1
        priv_ref = refs[idx]; idx += 1

        enc_wbs = [(refs[idx + 2 * i], refs[idx + 2 * i + 1]) for i in range(n_enc)]
        idx += 2 * n_enc

        w_obs0, w_lat0, b0 = refs[idx], refs[idx + 1], refs[idx + 2]; idx += 3

        a_wbs = [(refs[idx + 2 * i], refs[idx + 2 * i + 1]) for i in range(n_a_rest)]
        idx += 2 * n_a_rest
        c_wbs = [(refs[idx + 2 * i], refs[idx + 2 * i + 1]) for i in range(n_c_rest)]
        idx += 2 * n_c_rest

        out_ref = refs[idx]

        obs = obs_ref[...]
        priv = priv_ref[...]

        # --- env factor encoder (padded lanes of latent are exactly zero) ---
        latent = _run_mlp(priv, enc_wbs)

        # --- fused actor+critic first layer: one K=128, N=256 MXU tile per
        #     operand (obs part + latent part) instead of 4 lane-sparse dots ---
        h = _elu(jnp.dot(obs, w_obs0[...], preferred_element_type=jnp.float32)
                 + jnp.dot(latent, w_lat0[...], preferred_element_type=jnp.float32)
                 + b0[...])
        h_a = h[:, :a0_pad]      # 128-aligned slice
        h_c = h[:, a0_pad:]      # 128-aligned slice

        mean = _run_mlp(h_a, a_wbs)
        value = _run_mlp(h_c, c_wbs)

        # --- single lane-aligned output slab (all stores full-lane, unmasked) ---
        out_ref[:, 0:act_pad] = mean
        out_ref[:, act_pad:act_pad + val_pad] = value
        out_ref[:, act_pad + val_pad:act_pad + val_pad + lat_pad] = latent

    return kernel


# ----------------------------------------------------------------------------
# Kernel 2: adaptation_module + actor (act_inference)
# ----------------------------------------------------------------------------
def _make_act_inference_kernel(n_adapt, n_a_rest, act_pad, lat_pad):
    def kernel(*refs):
        idx = 0
        obs_ref = refs[idx]; idx += 1
        hist_ref = refs[idx]; idx += 1

        ad_wbs = [(refs[idx + 2 * i], refs[idx + 2 * i + 1]) for i in range(n_adapt)]
        idx += 2 * n_adapt

        w_obs0, w_lat0, b0 = refs[idx], refs[idx + 1], refs[idx + 2]; idx += 3

        a_wbs = [(refs[idx + 2 * i], refs[idx + 2 * i + 1]) for i in range(n_a_rest)]
        idx += 2 * n_a_rest

        out_ref = refs[idx]

        obs = obs_ref[...]
        hist = hist_ref[...]

        latent = _run_mlp(hist, ad_wbs)

        h = _elu(jnp.dot(obs, w_obs0[...], preferred_element_type=jnp.float32)
                 + jnp.dot(latent, w_lat0[...], preferred_element_type=jnp.float32)
                 + b0[...])
        mean = _run_mlp(h, a_wbs)

        out_ref[:, 0:act_pad] = mean
        out_ref[:, act_pad:act_pad + lat_pad] = latent

    return kernel


# ----------------------------------------------------------------------------
# Parameter construction (deterministic, PyTorch-default-style uniform init)
# ----------------------------------------------------------------------------
def _init_linear(key, fan_in, fan_out):
    kw, kb = jax.random.split(key)
    bound = 1.0 / jnp.sqrt(float(fan_in))
    w = jax.random.uniform(kw, (fan_in, fan_out), jnp.float32, -bound, bound)
    b = jax.random.uniform(kb, (1, fan_out), jnp.float32, -bound, bound)
    return w, b


def _init_mlp(key, dims):
    keys = jax.random.split(key, len(dims) - 1)
    return [_init_linear(keys[i], dims[i], dims[i + 1]) for i in range(len(dims) - 1)]


def make_actor_critic_params(key, num_obs, num_privileged_obs, num_obs_history,
                             num_actions,
                             actor_hidden_dims, critic_hidden_dims,
                             encoder_hidden_dims, adaptation_hidden_dims,
                             encoder_latent_dims, init_noise_std=1.0):
    k_enc, k_ad, k_act, k_crit = jax.random.split(key, 4)
    return {
        "encoder": _init_mlp(
            k_enc, [num_privileged_obs] + list(encoder_hidden_dims) + [encoder_latent_dims]),
        "adaptation": _init_mlp(
            k_ad, [num_obs_history] + list(adaptation_hidden_dims) + [encoder_latent_dims]),
        "actor": _init_mlp(
            k_act, [num_obs + encoder_latent_dims] + list(actor_hidden_dims) + [num_actions]),
        "critic": _init_mlp(
            k_crit, [num_obs + encoder_latent_dims] + list(critic_hidden_dims) + [1]),
        "std": init_noise_std * jnp.ones((num_actions,), jnp.float32),
    }


# ----------------------------------------------------------------------------
# Wrapper-side weight packing / padding (layout plumbing only)
# ----------------------------------------------------------------------------
def _pad_wb(w, b):
    k, n = w.shape
    kp, np_ = _round_up(k, _LANE), _round_up(n, _LANE)
    wp = jnp.pad(w, ((0, kp - k), (0, np_ - n)))
    bp = jnp.pad(b, ((0, 0), (0, np_ - n)))
    return wp, bp


def _pad_mlp(wbs):
    return [_pad_wb(w, b) for (w, b) in wbs]


def _pack_fused_first_layer(actor_wb0, critic_wb0, num_obs, latent_dim):
    """Split concat(obs, latent) weight into obs/latent parts, pack actor+critic along N."""
    (wa, ba), (wc, bc) = actor_wb0, critic_wb0
    op = _round_up(num_obs, _LANE)
    lp = _round_up(latent_dim, _LANE)
    hap = _round_up(wa.shape[1], _LANE)
    hcp = _round_up(wc.shape[1], _LANE)
    w_obs = jnp.concatenate([
        jnp.pad(wa[:num_obs], ((0, op - num_obs), (0, hap - wa.shape[1]))),
        jnp.pad(wc[:num_obs], ((0, op - num_obs), (0, hcp - wc.shape[1])))], axis=1)
    w_lat = jnp.concatenate([
        jnp.pad(wa[num_obs:], ((0, lp - latent_dim), (0, hap - wa.shape[1]))),
        jnp.pad(wc[num_obs:], ((0, lp - latent_dim), (0, hcp - wc.shape[1])))], axis=1)
    b = jnp.concatenate([
        jnp.pad(ba, ((0, 0), (0, hap - ba.shape[1]))),
        jnp.pad(bc, ((0, 0), (0, hcp - bc.shape[1])))], axis=1)
    return w_obs, w_lat, b, hap


def _pack_actor_first_layer(actor_wb0, num_obs, latent_dim):
    (wa, ba) = actor_wb0
    op = _round_up(num_obs, _LANE)
    lp = _round_up(latent_dim, _LANE)
    hap = _round_up(wa.shape[1], _LANE)
    w_obs = jnp.pad(wa[:num_obs], ((0, op - num_obs), (0, hap - wa.shape[1])))
    w_lat = jnp.pad(wa[num_obs:], ((0, lp - latent_dim), (0, hap - wa.shape[1])))
    b = jnp.pad(ba, ((0, 0), (0, hap - ba.shape[1])))
    return w_obs, w_lat, b


def _flat(wbs):
    out = []
    for w, b in wbs:
        out.extend([w, b])
    return out


def _vmem_limit(weight_args, io_bytes):
    # weights are single-buffered (constant index_map), activations are
    # double-buffered; add fixed headroom; cap below v7x's 64 MiB physical VMEM.
    weight_bytes = sum(int(a.size) * a.dtype.itemsize for a in weight_args)
    return int(min(weight_bytes + 4 * io_bytes + (16 << 20), 48 << 20))


# ----------------------------------------------------------------------------
# Wrappers calling pallas_call
# ----------------------------------------------------------------------------
@functools.partial(jax.jit, static_argnames=("num_obs", "block_batch"))
def actor_critic_forward(obs, priv_obs, params, *, num_obs, block_batch=1024):
    """Returns (action_mean, action_std, value, latent)."""
    batch = obs.shape[0]
    num_priv = priv_obs.shape[1]
    latent_dim = params["encoder"][-1][0].shape[1]
    num_actions = params["actor"][-1][0].shape[1]

    op = _round_up(num_obs, _LANE)
    pp = _round_up(num_priv, _LANE)
    lp = _round_up(latent_dim, _LANE)
    ap = _round_up(num_actions, _LANE)
    vp = _LANE
    out_w = ap + vp + lp

    # batch tiling (TB multiple of 8; grid axis "parallel")
    tb = min(block_batch, _round_up(batch, _SUBLANE))
    b_pad = _round_up(batch, tb)
    grid = (b_pad // tb,)

    obs_p = jnp.pad(obs, ((0, b_pad - batch), (0, op - num_obs)))
    priv_p = jnp.pad(priv_obs, ((0, b_pad - batch), (0, pp - num_priv)))

    enc_p = _pad_mlp(params["encoder"])
    w_obs0, w_lat0, b0, a0_pad = _pack_fused_first_layer(
        params["actor"][0], params["critic"][0], num_obs, latent_dim)
    a_rest = _pad_mlp(params["actor"][1:])
    c_rest = _pad_mlp(params["critic"][1:])

    args = ([obs_p, priv_p] + _flat(enc_p)
            + [w_obs0, w_lat0, b0] + _flat(a_rest) + _flat(c_rest))

    in_specs = ([pl.BlockSpec((tb, op), lambda i: (i, 0)),
                 pl.BlockSpec((tb, pp), lambda i: (i, 0))]
                + [pl.BlockSpec(a.shape, lambda i: (0, 0)) for a in args[2:]])
    out_specs = pl.BlockSpec((tb, out_w), lambda i: (i, 0))

    # advisory cost estimate (padded dims)
    kn = sum(w.shape[0] * w.shape[1] for w, _ in enc_p)
    elu = sum(w.shape[1] for w, _ in enc_p[:-1])
    kn += w_obs0.shape[0] * w_obs0.shape[1] + w_lat0.shape[0] * w_lat0.shape[1]
    elu += w_obs0.shape[1]
    for rest in (a_rest, c_rest):
        kn += sum(w.shape[0] * w.shape[1] for w, _ in rest)
        elu += sum(w.shape[1] for w, _ in rest[:-1])
    bytes_accessed = int(sum(int(a.size) * a.dtype.itemsize for a in args)
                         + b_pad * out_w * 4)
    cost = pl.CostEstimate(flops=2 * b_pad * kn, transcendentals=b_pad * elu,
                           bytes_accessed=bytes_accessed)

    io_bytes = (tb * (op + pp) + tb * out_w) * 4
    vmem_limit = _vmem_limit(args[2:], io_bytes)

    slab = pl.pallas_call(
        _make_actor_critic_kernel(len(enc_p), len(a_rest), len(c_rest),
                                  a0_pad, ap, vp, lp),
        out_shape=jax.ShapeDtypeStruct((b_pad, out_w), jnp.float32),
        grid=grid,
        in_specs=in_specs,
        out_specs=out_specs,
        compiler_params=pltpu.CompilerParams(
            dimension_semantics=("parallel",),
            vmem_limit_bytes=vmem_limit),
        cost_estimate=cost,
    )(*args)

    mean = slab[:batch, :num_actions]
    value = slab[:batch, ap:ap + 1]
    latent = slab[:batch, ap + vp:ap + vp + latent_dim]
    std = mean * 0.0 + params["std"]  # Normal(mean, mean*0 + std)
    return mean, std, value, latent


@functools.partial(jax.jit, static_argnames=("num_obs", "block_batch"))
def act_inference_forward(obs, obs_history, params, *, num_obs, block_batch=1024):
    """Returns (actions_mean, latent) -- act_inference path."""
    batch = obs.shape[0]
    num_hist = obs_history.shape[1]
    latent_dim = params["adaptation"][-1][0].shape[1]
    num_actions = params["actor"][-1][0].shape[1]

    op = _round_up(num_obs, _LANE)
    hp = _round_up(num_hist, _LANE)
    lp = _round_up(latent_dim, _LANE)
    ap = _round_up(num_actions, _LANE)
    out_w = ap + lp

    tb = min(block_batch, _round_up(batch, _SUBLANE))
    b_pad = _round_up(batch, tb)
    grid = (b_pad // tb,)

    obs_p = jnp.pad(obs, ((0, b_pad - batch), (0, op - num_obs)))
    hist_p = jnp.pad(obs_history, ((0, b_pad - batch), (0, hp - num_hist)))

    ad_p = _pad_mlp(params["adaptation"])
    w_obs0, w_lat0, b0 = _pack_actor_first_layer(params["actor"][0], num_obs, latent_dim)
    a_rest = _pad_mlp(params["actor"][1:])

    args = [obs_p, hist_p] + _flat(ad_p) + [w_obs0, w_lat0, b0] + _flat(a_rest)

    in_specs = ([pl.BlockSpec((tb, op), lambda i: (i, 0)),
                 pl.BlockSpec((tb, hp), lambda i: (i, 0))]
                + [pl.BlockSpec(a.shape, lambda i: (0, 0)) for a in args[2:]])
    out_specs = pl.BlockSpec((tb, out_w), lambda i: (i, 0))

    kn = sum(w.shape[0] * w.shape[1] for w, _ in ad_p)
    elu = sum(w.shape[1] for w, _ in ad_p[:-1])
    kn += w_obs0.shape[0] * w_obs0.shape[1] + w_lat0.shape[0] * w_lat0.shape[1]
    elu += w_obs0.shape[1]
    kn += sum(w.shape[0] * w.shape[1] for w, _ in a_rest)
    elu += sum(w.shape[1] for w, _ in a_rest[:-1])
    bytes_accessed = int(sum(int(a.size) * a.dtype.itemsize for a in args)
                         + b_pad * out_w * 4)
    cost = pl.CostEstimate(flops=2 * b_pad * kn, transcendentals=b_pad * elu,
                           bytes_accessed=bytes_accessed)

    io_bytes = (tb * (op + hp) + tb * out_w) * 4
    vmem_limit = _vmem_limit(args[2:], io_bytes)

    slab = pl.pallas_call(
        _make_act_inference_kernel(len(ad_p), len(a_rest), ap, lp),
        out_shape=jax.ShapeDtypeStruct((b_pad, out_w), jnp.float32),
        grid=grid,
        in_specs=in_specs,
        out_specs=out_specs,
        compiler_params=pltpu.CompilerParams(
            dimension_semantics=("parallel",),
            vmem_limit_bytes=vmem_limit),
        cost_estimate=cost,
    )(*args)

    mean = slab[:batch, :num_actions]
    latent = slab[:batch, ap:ap + latent_dim]
    return mean, latent


# ----------------------------------------------------------------------------
# Pure-JAX reference (mirrors the PyTorch module's math exactly)
# ----------------------------------------------------------------------------
def _mlp_ref(x, wbs):
    n = len(wbs)
    for i, (w, b) in enumerate(wbs):
        x = x @ w + b
        if i < n - 1:
            x = jnp.where(x > 0, x, jnp.expm1(x))
    return x


def _reference(obs, priv_obs, obs_history, params):
    latent_e = _mlp_ref(priv_obs, params["encoder"])
    mean = _mlp_ref(jnp.concatenate([obs, latent_e], axis=-1), params["actor"])
    value = _mlp_ref(jnp.concatenate([obs, latent_e], axis=-1), params["critic"])
    latent_a = _mlp_ref(obs_history, params["adaptation"])
    mean_inf = _mlp_ref(jnp.concatenate([obs, latent_a], axis=-1), params["actor"])
    return mean, value, latent_e, mean_inf, latent_a


# TODO(synk): torch.distributions.Normal sampling / log_prob / entropy (stateful
# distribution object) is not a kernel concern; this script returns (mean, std).

# ----------------------------------------------------------------------------
if __name__ == "__main__":
    batch = 4
    num_obs = 48
    num_privileged_obs = 24
    num_obs_history = 120
    num_actions = 12
    actor_hidden_dims = [64, 64, 64]
    critic_hidden_dims = [64, 64, 64]
    encoder_hidden_dims = [64, 32]
    adaptation_hidden_dims = [64, 32]
    encoder_latent_dims = 18

    key = jax.random.PRNGKey(0)
    k_param, k_obs, k_priv, k_hist = jax.random.split(key, 4)

    params = make_actor_critic_params(
        k_param, num_obs, num_privileged_obs, num_obs_history, num_actions,
        actor_hidden_dims, critic_hidden_dims,
        encoder_hidden_dims, adaptation_hidden_dims,
        encoder_latent_dims, init_noise_std=1.0)

    obs = jax.random.normal(k_obs, (batch, num_obs), jnp.float32)
    priv_obs = jax.random.normal(k_priv, (batch, num_privileged_obs), jnp.float32)
    obs_history = jax.random.normal(k_hist, (batch, num_obs_history), jnp.float32)

    # Pallas kernels
    mean, std, value, latent = actor_critic_forward(obs, priv_obs, params, num_obs=num_obs)
    mean_inf, latent_ad = act_inference_forward(obs, obs_history, params, num_obs=num_obs)
    jax.block_until_ready((mean, std, value, latent, mean_inf, latent_ad))

    # Reference check
    r_mean, r_value, r_latent, r_mean_inf, r_latent_ad = _reference(
        obs, priv_obs, obs_history, params)

    assert mean.shape == (batch, num_actions)
    assert std.shape == (batch, num_actions)
    assert value.shape == (batch, 1)
    assert latent.shape == (batch, encoder_latent_dims)
    assert mean_inf.shape == (batch, num_actions)
    assert latent_ad.shape == (batch, encoder_latent_dims)

    tol = dict(rtol=1e-3, atol=1e-3)
    assert jnp.allclose(mean, r_mean, **tol)
    assert jnp.allclose(value, r_value, **tol)
    assert jnp.allclose(latent, r_latent, **tol)
    assert jnp.allclose(mean_inf, r_mean_inf, **tol)
    assert jnp.allclose(latent_ad, r_latent_ad, **tol)
    assert jnp.allclose(std, jnp.ones_like(mean), **tol)

    print("KERNEL_OK")
</pallas_src>

<mosaic_0001>
module attributes {stable_mosaic.version = 11 : i64} {
  func.func @kernel(%arg0: i32, %arg1: memref<8x128xf32, #tpu.memory_space<vmem>>, %arg2: memref<8x128xf32, #tpu.memory_space<vmem>>, %arg3: memref<128x128xf32, #tpu.memory_space<vmem>>, %arg4: memref<1x128xf32, #tpu.memory_space<vmem>>, %arg5: memref<128x128xf32, #tpu.memory_space<vmem>>, %arg6: memref<1x128xf32, #tpu.memory_space<vmem>>, %arg7: memref<128x128xf32, #tpu.memory_space<vmem>>, %arg8: memref<1x128xf32, #tpu.memory_space<vmem>>, %arg9: memref<128x256xf32, #tpu.memory_space<vmem>>, %arg10: memref<128x256xf32, #tpu.memory_space<vmem>>, %arg11: memref<1x256xf32, #tpu.memory_space<vmem>>, %arg12: memref<128x128xf32, #tpu.memory_space<vmem>>, %arg13: memref<1x128xf32, #tpu.memory_space<vmem>>, %arg14: memref<128x128xf32, #tpu.memory_space<vmem>>, %arg15: memref<1x128xf32, #tpu.memory_space<vmem>>, %arg16: memref<128x128xf32, #tpu.memory_space<vmem>>, %arg17: memref<1x128xf32, #tpu.memory_space<vmem>>, %arg18: memref<128x128xf32, #tpu.memory_space<vmem>>, %arg19: memref<1x128xf32, #tpu.memory_space<vmem>>, %arg20: memref<128x128xf32, #tpu.memory_space<vmem>>, %arg21: memref<1x128xf32, #tpu.memory_space<vmem>>, %arg22: memref<128x128xf32, #tpu.memory_space<vmem>>, %arg23: memref<1x128xf32, #tpu.memory_space<vmem>>, %arg24: memref<8x384xf32, #tpu.memory_space<vmem>>) attributes {dimension_semantics = [#tpu.dimension_semantics<parallel>], iteration_bounds = array<i64: 1>, scalar_prefetch = 0 : i64, scratch_operands = 0 : i64, tpu.core_type = #tpu.core_type<tc>, window_params = [{transform_indices = @transform_0, window_bounds = array<i64: 8, 128>}, {transform_indices = @transform_1, window_bounds = array<i64: 8, 128>}, {pipeline_mode = #tpu.pipeline_mode<synchronous>, transform_indices = @transform_2, window_bounds = array<i64: 128, 128>}, {pipeline_mode = #tpu.pipeline_mode<synchronous>, transform_indices = @transform_3, window_bounds = array<i64: 1, 128>}, {pipeline_mode = #tpu.pipeline_mode<synchronous>, transform_indices = @transform_4, window_bounds = array<i64: 128, 128>}, {pipeline_mode = #tpu.pipeline_mode<synchronous>, transform_indices = @transform_5, window_bounds = array<i64: 1, 128>}, {pipeline_mode = #tpu.pipeline_mode<synchronous>, transform_indices = @transform_6, window_bounds = array<i64: 128, 128>}, {pipeline_mode = #tpu.pipeline_mode<synchronous>, transform_indices = @transform_7, window_bounds = array<i64: 1, 128>}, {pipeline_mode = #tpu.pipeline_mode<synchronous>, transform_indices = @transform_8, window_bounds = array<i64: 128, 256>}, {pipeline_mode = #tpu.pipeline_mode<synchronous>, transform_indices = @transform_9, window_bounds = array<i64: 128, 256>}, {pipeline_mode = #tpu.pipeline_mode<synchronous>, transform_indices = @transform_10, window_bounds = array<i64: 1, 256>}, {pipeline_mode = #tpu.pipeline_mode<synchronous>, transform_indices = @transform_11, window_bounds = array<i64: 128, 128>}, {pipeline_mode = #tpu.pipeline_mode<synchronous>, transform_indices = @transform_12, window_bounds = array<i64: 1, 128>}, {pipeline_mode = #tpu.pipeline_mode<synchronous>, transform_indices = @transform_13, window_bounds = array<i64: 128, 128>}, {pipeline_mode = #tpu.pipeline_mode<synchronous>, transform_indices = @transform_14, window_bounds = array<i64: 1, 128>}, {pipeline_mode = #tpu.pipeline_mode<synchronous>, transform_indices = @transform_15, window_bounds = array<i64: 128, 128>}, {pipeline_mode = #tpu.pipeline_mode<synchronous>, transform_indices = @transform_16, window_bounds = array<i64: 1, 128>}, {pipeline_mode = #tpu.pipeline_mode<synchronous>, transform_indices = @transform_17, window_bounds = array<i64: 128, 128>}, {pipeline_mode = #tpu.pipeline_mode<synchronous>, transform_indices = @transform_18, window_bounds = array<i64: 1, 128>}, {pipeline_mode = #tpu.pipeline_mode<synchronous>, transform_indices = @transform_19, window_bounds = array<i64: 128, 128>}, {pipeline_mode = #tpu.pipeline_mode<synchronous>, transform_indices = @transform_20, window_bounds = array<i64: 1, 128>}, {pipeline_mode = #tpu.pipeline_mode<synchronous>, transform_indices = @transform_21, window_bounds = array<i64: 128, 128>}, {pipeline_mode = #tpu.pipeline_mode<synchronous>, transform_indices = @transform_22, window_bounds = array<i64: 1, 128>}, {transform_indices = @transform_23, window_bounds = array<i64: 8, 384>}]} {
    %c0 = arith.constant 0 : index
    %c0_0 = arith.constant 0 : index
    %0 = vector.load %arg1[%c0, %c0_0] : memref<8x128xf32, #tpu.memory_space<vmem>>, vector<8x128xf32>
    %c0_1 = arith.constant 0 : index
    %c0_2 = arith.constant 0 : index
    %1 = vector.load %arg2[%c0_1, %c0_2] : memref<8x128xf32, #tpu.memory_space<vmem>>, vector<8x128xf32>
    %c0_3 = arith.constant 0 : index
    %c0_4 = arith.constant 0 : index
    %2 = vector.load %arg3[%c0_3, %c0_4] : memref<128x128xf32, #tpu.memory_space<vmem>>, vector<128x128xf32>
    %cst = arith.constant dense<0.000000e+00> : vector<8x128xf32>
    %3 = tpu.matmul %1, %2, %cst {dimension_numbers = #tpu.dot_dimension_numbers<[1], [0], [0], [1], [0, 0, 1, 1], [], []>} : vector<8x128xf32>, vector<128x128xf32>, vector<8x128xf32> -> vector<8x128xf32>
    %c0_5 = arith.constant 0 : index
    %c0_6 = arith.constant 0 : index
    %4 = vector.load %arg4[%c0_5, %c0_6] : memref<1x128xf32, #tpu.memory_space<vmem>>, vector<1x128xf32>
    %5 = vector.broadcast %4 : vector<1x128xf32> to vector<8x128xf32>
    %6 = arith.addf %3, %5 : vector<8x128xf32>
    %cst_7 = arith.constant 0.000000e+00 : f32
    %7 = vector.broadcast %cst_7 : f32 to vector<8x128xf32>
    %8 = arith.cmpf ogt, %6, %7 : vector<8x128xf32>
    %cst_8 = arith.constant 0.000000e+00 : f32
    %9 = vector.broadcast %cst_8 : f32 to vector<8x128xf32>
    %10 = arith.minimumf %6, %9 : vector<8x128xf32>
    %11 = math.exp %10 : vector<8x128xf32>
    %cst_9 = arith.constant 1.000000e+00 : f32
    %12 = vector.broadcast %cst_9 : f32 to vector<8x128xf32>
    %13 = arith.subf %11, %12 : vector<8x128xf32>
    %14 = arith.select %8, %6, %13 : vector<8x128xi1>, vector<8x128xf32>
    %c0_10 = arith.constant 0 : index
    %c0_11 = arith.constant 0 : index
    %15 = vector.load %arg5[%c0_10, %c0_11] : memref<128x128xf32, #tpu.memory_space<vmem>>, vector<128x128xf32>
    %cst_12 = arith.constant dense<0.000000e+00> : vector<8x128xf32>
    %16 = tpu.matmul %14, %15, %cst_12 {dimension_numbers = #tpu.dot_dimension_numbers<[1], [0], [0], [1], [0, 0, 1, 1], [], []>} : vector<8x128xf32>, vector<128x128xf32>, vector<8x128xf32> -> vector<8x128xf32>
    %c0_13 = arith.constant 0 : index
    %c0_14 = arith.constant 0 : index
    %17 = vector.load %arg6[%c0_13, %c0_14] : memref<1x128xf32, #tpu.memory_space<vmem>>, vector<1x128xf32>
    %18 = vector.broadcast %17 : vector<1x128xf32> to vector<8x128xf32>
    %19 = arith.addf %16, %18 : vector<8x128xf32>
    %cst_15 = arith.constant 0.000000e+00 : f32
    %20 = vector.broadcast %cst_15 : f32 to vector<8x128xf32>
    %21 = arith.cmpf ogt, %19, %20 : vector<8x128xf32>
    %cst_16 = arith.constant 0.000000e+00 : f32
    %22 = vector.broadcast %cst_16 : f32 to vector<8x128xf32>
    %23 = arith.minimumf %19, %22 : vector<8x128xf32>
    %24 = math.exp %23 : vector<8x128xf32>
    %cst_17 = arith.constant 1.000000e+00 : f32
    %25 = vector.broadcast %cst_17 : f32 to vector<8x128xf32>
    %26 = arith.subf %24, %25 : vector<8x128xf32>
    %27 = arith.select %21, %19, %26 : vector<8x128xi1>, vector<8x128xf32>
    %c0_18 = arith.constant 0 : index
    %c0_19 = arith.constant 0 : index
    %28 = vector.load %arg7[%c0_18, %c0_19] : memref<128x128xf32, #tpu.memory_space<vmem>>, vector<128x128xf32>
    %cst_20 = arith.constant dense<0.000000e+00> : vector<8x128xf32>
    %29 = tpu.matmul %27, %28, %cst_20 {dimension_numbers = #tpu.dot_dimension_numbers<[1], [0], [0], [1], [0, 0, 1, 1], [], []>} : vector<8x128xf32>, vector<128x128xf32>, vector<8x128xf32> -> vector<8x128xf32>
    %c0_21 = arith.constant 0 : index
    %c0_22 = arith.constant 0 : index
    %30 = vector.load %arg8[%c0_21, %c0_22] : memref<1x128xf32, #tpu.memory_space<vmem>>, vector<1x128xf32>
    %31 = vector.broadcast %30 : vector<1x128xf32> to vector<8x128xf32>
    %32 = arith.addf %29, %31 : vector<8x128xf32>
    %c0_23 = arith.constant 0 : index
    %c0_24 = arith.constant 0 : index
    %33 = vector.load %arg9[%c0_23, %c0_24] : memref<128x256xf32, #tpu.memory_space<vmem>>, vector<128x256xf32>
    %cst_25 = arith.constant dense<0.000000e+00> : vector<8x256xf32>
    %34 = tpu.matmul %0, %33, %cst_25 {dimension_numbers = #tpu.dot_dimension_numbers<[1], [0], [0], [1], [0, 0, 1, 1], [], []>} : vector<8x128xf32>, vector<128x256xf32>, vector<8x256xf32> -> vector<8x256xf32>
    %c0_26 = arith.constant 0 : index
    %c0_27 = arith.constant 0 : index
    %35 = vector.load %arg10[%c0_26, %c0_27] : memref<128x256xf32, #tpu.memory_space<vmem>>, vector<128x256xf32>
    %cst_28 = arith.constant dense<0.000000e+00> : vector<8x256xf32>
    %36 = tpu.matmul %32, %35, %cst_28 {dimension_numbers = #tpu.dot_dimension_numbers<[1], [0], [0], [1], [0, 0, 1, 1], [], []>} : vector<8x128xf32>, vector<128x256xf32>, vector<8x256xf32> -> vector<8x256xf32>
    %37 = arith.addf %34, %36 : vector<8x256xf32>
    %c0_29 = arith.constant 0 : index
    %c0_30 = arith.constant 0 : index
    %38 = vector.load %arg11[%c0_29, %c0_30] : memref<1x256xf32, #tpu.memory_space<vmem>>, vector<1x256xf32>
    %39 = vector.broadcast %38 : vector<1x256xf32> to vector<8x256xf32>
    %40 = arith.addf %37, %39 : vector<8x256xf32>
    %cst_31 = arith.constant 0.000000e+00 : f32
    %41 = vector.broadcast %cst_31 : f32 to vector<8x256xf32>
    %42 = arith.cmpf ogt, %40, %41 : vector<8x256xf32>
    %cst_32 = arith.constant 0.000000e+00 : f32
    %43 = vector.broadcast %cst_32 : f32 to vector<8x256xf32>
    %44 = arith.minimumf %40, %43 : vector<8x256xf32>
    %45 = math.exp %44 : vector<8x256xf32>
    %cst_33 = arith.constant 1.000000e+00 : f32
    %46 = vector.broadcast %cst_33 : f32 to vector<8x256xf32>
    %47 = arith.subf %45, %46 : vector<8x256xf32>
    %48 = arith.select %42, %40, %47 : vector<8x256xi1>, vector<8x256xf32>
    %49 = vector.extract_strided_slice %48 {offsets = [0, 0], sizes = [8, 128], strides = [1, 1]} : vector<8x256xf32> to vector<8x128xf32>
    %50 = vector.extract_strided_slice %48 {offsets = [0, 128], sizes = [8, 128], strides = [1, 1]} : vector<8x256xf32> to vector<8x128xf32>
    %c0_34 = arith.constant 0 : index
    %c0_35 = arith.constant 0 : index
    %51 = vector.load %arg12[%c0_34, %c0_35] : memref<128x128xf32, #tpu.memory_space<vmem>>, vector<128x128xf32>
    %cst_36 = arith.constant dense<0.000000e+00> : vector<8x128xf32>
    %52 = tpu.matmul %49, %51, %cst_36 {dimension_numbers = #tpu.dot_dimension_numbers<[1], [0], [0], [1], [0, 0, 1, 1], [], []>} : vector<8x128xf32>, vector<128x128xf32>, vector<8x128xf32> -> vector<8x128xf32>
    %c0_37 = arith.constant 0 : index
    %c0_38 = arith.constant 0 : index
    %53 = vector.load %arg13[%c0_37, %c0_38] : memref<1x128xf32, #tpu.memory_space<vmem>>, vector<1x128xf32>
    %54 = vector.broadcast %53 : vector<1x128xf32> to vector<8x128xf32>
    %55 = arith.addf %52, %54 : vector<8x128xf32>
    %cst_39 = arith.constant 0.000000e+00 : f32
    %56 = vector.broadcast %cst_39 : f32 to vector<8x128xf32>
    %57 = arith.cmpf ogt, %55, %56 : vector<8x128xf32>
    %cst_40 = arith.constant 0.000000e+00 : f32
    %58 = vector.broadcast %cst_40 : f32 to vector<8x128xf32>
    %59 = arith.minimumf %55, %58 : vector<8x128xf32>
    %60 = math.exp %59 : vector<8x128xf32>
    %cst_41 = arith.constant 1.000000e+00 : f32
    %61 = vector.broadcast %cst_41 : f32 to vector<8x128xf32>
    %62 = arith.subf %60, %61 : vector<8x128xf32>
    %63 = arith.select %57, %55, %62 : vector<8x128xi1>, vector<8x128xf32>
    %c0_42 = arith.constant 0 : index
    %c0_43 = arith.constant 0 : index
    %64 = vector.load %arg14[%c0_42, %c0_43] : memref<128x128xf32, #tpu.memory_space<vmem>>, vector<128x128xf32>
    %cst_44 = arith.constant dense<0.000000e+00> : vector<8x128xf32>
    %65 = tpu.matmul %63, %64, %cst_44 {dimension_numbers = #tpu.dot_dimension_numbers<[1], [0], [0], [1], [0, 0, 1, 1], [], []>} : vector<8x128xf32>, vector<128x128xf32>, vector<8x128xf32> -> vector<8x128xf32>
    %c0_45 = arith.constant 0 : index
    %c0_46 = arith.constant 0 : index
    %66 = vector.load %arg15[%c0_45, %c0_46] : memref<1x128xf32, #tpu.memory_space<vmem>>, vector<1x128xf32>
    %67 = vector.broadcast %66 : vector<1x128xf32> to vector<8x128xf32>
    %68 = arith.addf %65, %67 : vector<8x128xf32>
    %cst_47 = arith.constant 0.000000e+00 : f32
    %69 = vector.broadcast %cst_47 : f32 to vector<8x128xf32>
    %70 = arith.cmpf ogt, %68, %69 : vector<8x128xf32>
    %cst_48 = arith.constant 0.000000e+00 : f32
    %71 = vector.broadcast %cst_48 : f32 to vector<8x128xf32>
    %72 = arith.minimumf %68, %71 : vector<8x128xf32>
    %73 = math.exp %72 : vector<8x128xf32>
    %cst_49 = arith.constant 1.000000e+00 : f32
    %74 = vector.broadcast %cst_49 : f32 to vector<8x128xf32>
    %75 = arith.subf %73, %74 : vector<8x128xf32>
    %76 = arith.select %70, %68, %75 : vector<8x128xi1>, vector<8x128xf32>
    %c0_50 = arith.constant 0 : index
    %c0_51 = arith.constant 0 : index
    %77 = vector.load %arg16[%c0_50, %c0_51] : memref<128x128xf32, #tpu.memory_space<vmem>>, vector<128x128xf32>
    %cst_52 = arith.constant dense<0.000000e+00> : vector<8x128xf32>
    %78 = tpu.matmul %76, %77, %cst_52 {dimension_numbers = #tpu.dot_dimension_numbers<[1], [0], [0], [1], [0, 0, 1, 1], [], []>} : vector<8x128xf32>, vector<128x128xf32>, vector<8x128xf32> -> vector<8x128xf32>
    %c0_53 = arith.constant 0 : index
    %c0_54 = arith.constant 0 : index
    %79 = vector.load %arg17[%c0_53, %c0_54] : memref<1x128xf32, #tpu.memory_space<vmem>>, vector<1x128xf32>
    %80 = vector.broadcast %79 : vector<1x128xf32> to vector<8x128xf32>
    %81 = arith.addf %78, %80 : vector<8x128xf32>
    %c0_55 = arith.constant 0 : index
    %c0_56 = arith.constant 0 : index
    %82 = vector.load %arg18[%c0_55, %c0_56] : memref<128x128xf32, #tpu.memory_space<vmem>>, vector<128x128xf32>
    %cst_57 = arith.constant dense<0.000000e+00> : vector<8x128xf32>
    %83 = tpu.matmul %50, %82, %cst_57 {dimension_numbers = #tpu.dot_dimension_numbers<[1], [0], [0], [1], [0, 0, 1, 1], [], []>} : vector<8x128xf32>, vector<128x128xf32>, vector<8x128xf32> -> vector<8x128xf32>
    %c0_58 = arith.constant 0 : index
    %c0_59 = arith.constant 0 : index
    %84 = vector.load %arg19[%c0_58, %c0_59] : memref<1x128xf32, #tpu.memory_space<vmem>>, vector<1x128xf32>
    %85 = vector.broadcast %84 : vector<1x128xf32> to vector<8x128xf32>
    %86 = arith.addf %83, %85 : vector<8x128xf32>
    %cst_60 = arith.constant 0.000000e+00 : f32
    %87 = vector.broadcast %cst_60 : f32 to vector<8x128xf32>
    %88 = arith.cmpf ogt, %86, %87 : vector<8x128xf32>
    %cst_61 = arith.constant 0.000000e+00 : f32
    %89 = vector.broadcast %cst_61 : f32 to vector<8x128xf32>
    %90 = arith.minimumf %86, %89 : vector<8x128xf32>
    %91 = math.exp %90 : vector<8x128xf32>
    %cst_62 = arith.constant 1.000000e+00 : f32
    %92 = vector.broadcast %cst_62 : f32 to vector<8x128xf32>
    %93 = arith.subf %91, %92 : vector<8x128xf32>
    %94 = arith.select %88, %86, %93 : vector<8x128xi1>, vector<8x128xf32>
    %c0_63 = arith.constant 0 : index
    %c0_64 = arith.constant 0 : index
    %95 = vector.load %arg20[%c0_63, %c0_64] : memref<128x128xf32, #tpu.memory_space<vmem>>, vector<128x128xf32>
    %cst_65 = arith.constant dense<0.000000e+00> : vector<8x128xf32>
    %96 = tpu.matmul %94, %95, %cst_65 {dimension_numbers = #tpu.dot_dimension_numbers<[1], [0], [0], [1], [0, 0, 1, 1], [], []>} : vector<8x128xf32>, vector<128x128xf32>, vector<8x128xf32> -> vector<8x128xf32>
    %c0_66 = arith.constant 0 : index
    %c0_67 = arith.constant 0 : index
    %97 = vector.load %arg21[%c0_66, %c0_67] : memref<1x128xf32, #tpu.memory_space<vmem>>, vector<1x128xf32>
    %98 = vector.broadcast %97 : vector<1x128xf32> to vector<8x128xf32>
    %99 = arith.addf %96, %98 : vector<8x128xf32>
    %cst_68 = arith.constant 0.000000e+00 : f32
    %100 = vector.broadcast %cst_68 : f32 to vector<8x128xf32>
    %101 = arith.cmpf ogt, %99, %100 : vector<8x128xf32>
    %cst_69 = arith.constant 0.000000e+00 : f32
    %102 = vector.broadcast %cst_69 : f32 to vector<8x128xf32>
    %103 = arith.minimumf %99, %102 : vector<8x128xf32>
    %104 = math.exp %103 : vector<8x128xf32>
    %cst_70 = arith.constant 1.000000e+00 : f32
    %105 = vector.broadcast %cst_70 : f32 to vector<8x128xf32>
    %106 = arith.subf %104, %105 : vector<8x128xf32>
    %107 = arith.select %101, %99, %106 : vector<8x128xi1>, vector<8x128xf32>
    %c0_71 = arith.constant 0 : index
    %c0_72 = arith.constant 0 : index
    %108 = vector.load %arg22[%c0_71, %c0_72] : memref<128x128xf32, #tpu.memory_space<vmem>>, vector<128x128xf32>
    %cst_73 = arith.constant dense<0.000000e+00> : vector<8x128xf32>
    %109 = tpu.matmul %107, %108, %cst_73 {dimension_numbers = #tpu.dot_dimension_numbers<[1], [0], [0], [1], [0, 0, 1, 1], [], []>} : vector<8x128xf32>, vector<128x128xf32>, vector<8x128xf32> -> vector<8x128xf32>
    %c0_74 = arith.constant 0 : index
    %c0_75 = arith.constant 0 : index
    %110 = vector.load %arg23[%c0_74, %c0_75] : memref<1x128xf32, #tpu.memory_space<vmem>>, vector<1x128xf32>
    %111 = vector.broadcast %110 : vector<1x128xf32> to vector<8x128xf32>
    %112 = arith.addf %109, %111 : vector<8x128xf32>
    %c0_76 = arith.constant 0 : index
    %c0_77 = arith.constant 0 : index
    %113 = vector.load %arg24[%c0_76, %c0_77] : memref<8x384xf32, #tpu.memory_space<vmem>>, vector<8x128xf32>
    tpu.vector_store %arg24[%c0_76, %c0_77], %81 {strides = array<i32>} : memref<8x384xf32, #tpu.memory_space<vmem>>, vector<8x128xf32>,
    %c0_78 = arith.constant 0 : index
    %c128 = arith.constant 128 : index
    %114 = vector.load %arg24[%c0_78, %c128] : memref<8x384xf32, #tpu.memory_space<vmem>>, vector<8x128xf32>
    tpu.vector_store %arg24[%c0_78, %c128], %112 {strides = array<i32>} : memref<8x384xf32, #tpu.memory_space<vmem>>, vector<8x128xf32>,
    %c0_79 = arith.constant 0 : index
    %c256 = arith.constant 256 : index
    %115 = vector.load %arg24[%c0_79, %c256] : memref<8x384xf32, #tpu.memory_space<vmem>>, vector<8x128xf32>
    tpu.vector_store %arg24[%c0_79, %c256], %32 {strides = array<i32>} : memref<8x384xf32, #tpu.memory_space<vmem>>, vector<8x128xf32>,
    return
  }
  func.func @transform_0(%arg0: i32) -> (i32, i32) {
    %c0_i32 = arith.constant 0 : i32
    %c0_i32_0 = arith.constant 0 : i32
    return %arg0, %c0_i32 : i32, i32
  }
  func.func @transform_1(%arg0: i32) -> (i32, i32) {
    %c0_i32 = arith.constant 0 : i32
    %c0_i32_0 = arith.constant 0 : i32
    return %arg0, %c0_i32 : i32, i32
  }
  func.func @transform_2(%arg0: i32) -> (i32, i32) {
    %c0_i32 = arith.constant 0 : i32
    %c0_i32_0 = arith.constant 0 : i32
    %c0_i32_1 = arith.constant 0 : i32
    return %c0_i32, %c0_i32_0 : i32, i32
  }
  func.func @transform_3(%arg0: i32) -> (i32, i32) {
    %c0_i32 = arith.constant 0 : i32
    %c0_i32_0 = arith.constant 0 : i32
    %c0_i32_1 = arith.constant 0 : i32
    return %c0_i32, %c0_i32_0 : i32, i32
  }
  func.func @transform_4(%arg0: i32) -> (i32, i32) {
    %c0_i32 = arith.constant 0 : i32
    %c0_i32_0 = arith.constant 0 : i32
    %c0_i32_1 = arith.constant 0 : i32
    return %c0_i32, %c0_i32_0 : i32, i32
  }
  func.func @transform_5(%arg0: i32) -> (i32, i32) {
    %c0_i32 = arith.constant 0 : i32
    %c0_i32_0 = arith.constant 0 : i32
    %c0_i32_1 = arith.constant 0 : i32
    return %c0_i32, %c0_i32_0 : i32, i32
  }
  func.func @transform_6(%arg0: i32) -> (i32, i32) {
    %c0_i32 = arith.constant 0 : i32
    %c0_i32_0 = arith.constant 0 : i32
    %c0_i32_1 = arith.constant 0 : i32
    return %c0_i32, %c0_i32_0 : i32, i32
  }
  func.func @transform_7(%arg0: i32) -> (i32, i32) {
    %c0_i32 = arith.constant 0 : i32
    %c0_i32_0 = arith.constant 0 : i32
    %c0_i32_1 = arith.constant 0 : i32
    return %c0_i32, %c0_i32_0 : i32, i32
  }
  func.func @transform_8(%arg0: i32) -> (i32, i32) {
    %c0_i32 = arith.constant 0 : i32
    %c0_i32_0 = arith.constant 0 : i32
    %c0_i32_1 = arith.constant 0 : i32
    return %c0_i32, %c0_i32_0 : i32, i32
  }
  func.func @transform_9(%arg0: i32) -> (i32, i32) {
    %c0_i32 = arith.constant 0 : i32
    %c0_i32_0 = arith.constant 0 : i32
    %c0_i32_1 = arith.constant 0 : i32
    return %c0_i32, %c0_i32_0 : i32, i32
  }
  func.func @transform_10(%arg0: i32) -> (i32, i32) {
    %c0_i32 = arith.constant 0 : i32
    %c0_i32_0 = arith.constant 0 : i32
    %c0_i32_1 = arith.constant 0 : i32
    return %c0_i32, %c0_i32_0 : i32, i32
  }
  func.func @transform_11(%arg0: i32) -> (i32, i32) {
    %c0_i32 = arith.constant 0 : i32
    %c0_i32_0 = arith.constant 0 : i32
    %c0_i32_1 = arith.constant 0 : i32
    return %c0_i32, %c0_i32_0 : i32, i32
  }
  func.func @transform_12(%arg0: i32) -> (i32, i32) {
    %c0_i32 = arith.constant 0 : i32
    %c0_i32_0 = arith.constant 0 : i32
    %c0_i32_1 = arith.constant 0 : i32
    return %c0_i32, %c0_i32_0 : i32, i32
  }
  func.func @transform_13(%arg0: i32) -> (i32, i32) {
    %c0_i32 = arith.constant 0 : i32
    %c0_i32_0 = arith.constant 0 : i32
    %c0_i32_1 = arith.constant 0 : i32
    return %c0_i32, %c0_i32_0 : i32, i32
  }
  func.func @transform_14(%arg0: i32) -> (i32, i32) {
    %c0_i32 = arith.constant 0 : i32
    %c0_i32_0 = arith.constant 0 : i32
    %c0_i32_1 = arith.constant 0 : i32
    return %c0_i32, %c0_i32_0 : i32, i32
  }
  func.func @transform_15(%arg0: i32) -> (i32, i32) {
    %c0_i32 = arith.constant 0 : i32
    %c0_i32_0 = arith.constant 0 : i32
    %c0_i32_1 = arith.constant 0 : i32
    return %c0_i32, %c0_i32_0 : i32, i32
  }
  func.func @transform_16(%arg0: i32) -> (i32, i32) {
    %c0_i32 = arith.constant 0 : i32
    %c0_i32_0 = arith.constant 0 : i32
    %c0_i32_1 = arith.constant 0 : i32
    return %c0_i32, %c0_i32_0 : i32, i32
  }
  func.func @transform_17(%arg0: i32) -> (i32, i32) {
    %c0_i32 = arith.constant 0 : i32
    %c0_i32_0 = arith.constant 0 : i32
    %c0_i32_1 = arith.constant 0 : i32
    return %c0_i32, %c0_i32_0 : i32, i32
  }
  func.func @transform_18(%arg0: i32) -> (i32, i32) {
    %c0_i32 = arith.constant 0 : i32
    %c0_i32_0 = arith.constant 0 : i32
    %c0_i32_1 = arith.constant 0 : i32
    return %c0_i32, %c0_i32_0 : i32, i32
  }
  func.func @transform_19(%arg0: i32) -> (i32, i32) {
    %c0_i32 = arith.constant 0 : i32
    %c0_i32_0 = arith.constant 0 : i32
    %c0_i32_1 = arith.constant 0 : i32
    return %c0_i32, %c0_i32_0 : i32, i32
  }
  func.func @transform_20(%arg0: i32) -> (i32, i32) {
    %c0_i32 = arith.constant 0 : i32
    %c0_i32_0 = arith.constant 0 : i32
    %c0_i32_1 = arith.constant 0 : i32
    return %c0_i32, %c0_i32_0 : i32, i32
  }
  func.func @transform_21(%arg0: i32) -> (i32, i32) {
    %c0_i32 = arith.constant 0 : i32
    %c0_i32_0 = arith.constant 0 : i32
    %c0_i32_1 = arith.constant 0 : i32
    return %c0_i32, %c0_i32_0 : i32, i32
  }
  func.func @transform_22(%arg0: i32) -> (i32, i32) {
    %c0_i32 = arith.constant 0 : i32
    %c0_i32_0 = arith.constant 0 : i32
    %c0_i32_1 = arith.constant 0 : i32
    return %c0_i32, %c0_i32_0 : i32, i32
  }
  func.func @transform_23(%arg0: i32) -> (i32, i32) {
    %c0_i32 = arith.constant 0 : i32
    %c0_i32_0 = arith.constant 0 : i32
    return %arg0, %c0_i32 : i32, i32
  }
}

</mosaic_0001>

<bundles_post_ra>
// kernel: actor_critic_forward.1
= control target key start
LH: loop header
LB: loop body
LE: loop exit
PB: predicated region body
PF: predicated region fallthrough
CT: control target
= control target key end

     0   :  { %s1465_s2 = inlined_call_operand.vmem [shape: f32[128,128], index: 2, kind: input, shape index: {}]   ;;  %s1466_s4 = inlined_call_operand.vmem [shape: f32[128,128], index: 4, kind: input, shape index: {}]   ;;  %s1467_s3 = inlined_call_operand.vmem [shape: f32[1,128], index: 3, kind: input, shape index: {}]   ;;  %s1468_s1 = inlined_call_operand.vmem [shape: f32[8,128], index: 1, kind: input, shape index: {}]   ;;  %s1469_s5 = inlined_call_operand.vmem [shape: f32[1,128], index: 5, kind: input, shape index: {}]   ;;  %s1470_s6 = inlined_call_operand.vmem [shape: f32[128,128], index: 6, kind: input, shape index: {}]   ;;  %s1471_s7 = inlined_call_operand.vmem [shape: f32[1,128], index: 7, kind: input, shape index: {}]   ;;  %s1472_s8 = inlined_call_operand.vmem [shape: f32[128,256], index: 8, kind: input, shape index: {}]   ;;  %s1473_s9 = inlined_call_operand.vmem [shape: f32[128,256], index: 9, kind: input, shape index: {}]   ;;  %s1474_s0 = inlined_call_operand.vmem [shape: f32[8,128], index: 0, kind: input, shape index: {}]   ;;  %s1475_s17 = inlined_call_operand.vmem [shape: f32[128,128], index: 17, kind: input, shape index: {}]   ;;  %s1476_s11 = inlined_call_operand.vmem [shape: f32[128,128], index: 11, kind: input, shape index: {}]   ;;  %s1477_s23 = inlined_call_operand.vmem [shape: f32[8,384], index: 23, kind: output, shape index: {}]   ;;  %s1478_s18 = inlined_call_operand.vmem [shape: f32[1,128], index: 18, kind: input, shape index: {}]   ;;  %s1479_s19 = inlined_call_operand.vmem [shape: f32[128,128], index: 19, kind: input, shape index: {}]   ;;  %s1480_s13 = inlined_call_operand.vmem [shape: f32[128,128], index: 13, kind: input, shape index: {}]   ;;  %s1481_s10 = inlined_call_operand.vmem [shape: f32[1,256], index: 10, kind: input, shape index: {}]   ;;  %s1482_s12 = inlined_call_operand.vmem [shape: f32[1,128], index: 12, kind: input, shape index: {}]   ;;  %s1483_s14 = inlined_call_operand.vmem [shape: f32[1,128], index: 14, kind: input, shape index: {}]   ;;  %s1484_s15 = inlined_call_operand.vmem [shape: f32[128,128], index: 15, kind: input, shape index: {}]   ;;  %s1485_s21 = inlined_call_operand.vmem [shape: f32[128,128], index: 21, kind: input, shape index: {}]   ;;  %s1486_s20 = inlined_call_operand.vmem [shape: f32[1,128], index: 20, kind: input, shape index: {}]   ;;  %s1487_s16 = inlined_call_operand.vmem [shape: f32[1,128], index: 16, kind: input, shape index: {}]   ;;  %s1488_s22 = inlined_call_operand.vmem [shape: f32[1,128], index: 22, kind: input, shape index: {}]  }
   0x1   :  { %1493 = sst [smem:[#allocation2_spill]] %s1465_s2  ;;  %v270_v59 = vld [vmem:[%s1473_s9 + $0xf0] sm:$0xff]  ;;  %v271_v60 = vld [vmem:[%s1473_s9 + $0xf8] sm:$0xff]  ;;  %v268_v62 = vld [vmem:[%s1473_s9 + $0xe0] sm:$0xff] }
   0x2   :  { %1494 = sst [smem:[#allocation3_spill]] %s1466_s4  ;;  %272 = vmatpush.msra.mxu3 %v270_v59  ;;  %v269_v63 = vld [vmem:[%s1473_s9 + $0xe8] sm:$0xff] }
   0x3   :  { %1495 = sst [smem:[#allocation4_spill]] %s1467_s3 }
   0x4   :  { %1496 = sst [smem:[#allocation5_spill]] %s1468_s1  ;;  %273 = vmatpush.msra.mxu3 %v268_v62 }
   0x5   :  { %1497 = sst [smem:[#allocation6_spill]] %s1469_s5 }
   0x6   :  { %1498 = sst [smem:[#allocation7_spill]] %s1470_s6 }
   0x7   :  { %1499 = sst [smem:[#allocation8_spill]] %s1471_s7 }
   0x8   :  { %1500 = sst [smem:[#allocation9_spill]] %s1472_s8 }
   0x9   :  { %s1501_s24 = sld [smem:[#allocation2_spill]] }
   0xa   :  { %s1502_s28 = sld [smem:[#allocation3_spill]] }
   0xb   :  { %s1503_s8 = sld [smem:[#allocation5_spill]] }
   0xc   :  { %s1505_s6 = sld [smem:[#allocation4_spill]] }
   0xd   :  { %s1507_s3 = sld [smem:[#allocation6_spill]] }
   0xf   :  { %v91_v0 = vld [vmem:[%s1501_s24 + $0x78] sm:$0xff]  ;;  %v90_v1 = vld [vmem:[%s1501_s24 + $0x70] sm:$0xff]  ;;  %v89_v2 = vld [vmem:[%s1501_s24 + $0x68] sm:$0xff] }
  0x10   :  { %96 = vmatpush.msra.mxu0 %v91_v0  ;;  %v88_v3 = vld [vmem:[%s1501_s24 + $0x60] sm:$0xff]  ;;  %v137_v4 = vld [vmem:[%s1502_s28 + $0x78] sm:$0xff]  ;;  %v136_v6 = vld [vmem:[%s1502_s28 + $0x70] sm:$0xff] }
  0x11   :  { %v87_v5 = vld [vmem:[%s1501_s24 + $0x58] sm:$0xff]  ;;  %142 = vmatpush.msra.mxu1 %v137_v4  ;;  %v135_v7 = vld [vmem:[%s1502_s28 + $0x68] sm:$0xff]  ;;  %v86_v8 = vld [vmem:[%s1501_s24 + $0x50] sm:$0xff] }
  0x12   :  { %97 = vmatpush.msra.mxu0 %v90_v1  ;;  %v134_v9 = vld [vmem:[%s1502_s28 + $0x60] sm:$0xff]  ;;  %v85_v10 = vld [vmem:[%s1501_s24 + $0x48] sm:$0xff]  ;;  %v133_v11 = vld [vmem:[%s1502_s28 + $0x58] sm:$0xff] }
  0x13   :  { %143 = vmatpush.msra.mxu1 %v136_v6  ;;  %v84_v12 = vld [vmem:[%s1501_s24 + $0x40] sm:$0xff]  ;;  %v132_v13 = vld [vmem:[%s1502_s28 + $0x50] sm:$0xff]  ;;  %v83_v14 = vld [vmem:[%s1501_s24 + $0x38] sm:$0xff] }
  0x14   :  { %98 = vmatpush.msra.mxu0 %v89_v2  ;;  %v131_v15 = vld [vmem:[%s1502_s28 + $0x48] sm:$0xff]  ;;  %v82_v16 = vld [vmem:[%s1501_s24 + $0x30] sm:$0xff]  ;;  %v80_v18 = vld [vmem:[%s1501_s24 + $0x20] sm:$0xff] }
  0x15   :  { %144 = vmatpush.msra.mxu1 %v135_v7  ;;  %v81_v17 = vld [vmem:[%s1501_s24 + $0x28] sm:$0xff]  ;;  %v79_v19 = vld [vmem:[%s1501_s24 + $0x18] sm:$0xff]  ;;  %v78_v20 = vld [vmem:[%s1501_s24 + $0x10] sm:$0xff] }
  0x16   :  { %99 = vmatpush.msra.mxu0 %v88_v3  ;;  %v77_v21 = vld [vmem:[%s1501_s24 + $0x8] sm:$0xff]  ;;  %v76_v22 = vld [vmem:[%s1501_s24] sm:$0xff]  ;;  %v129_v25 = vld [vmem:[%s1502_s28 + $0x38] sm:$0xff]  ;;  %s1504_s24 = sld [smem:[#allocation7_spill]] }
  0x17   :  { %145 = vmatpush.msra.mxu1 %v134_v9  ;;  %v75_v23 = vld [vmem:[%s1503_s8] sm:$0xff]  ;;  %v128_v26 = vld [vmem:[%s1502_s28 + $0x30] sm:$0xff]  ;;  %v127_v27 = vld [vmem:[%s1502_s28 + $0x28] sm:$0xff]  ;;  %s1506_s8 = sld [smem:[#allocation9_spill]] }
  0x18   :  { %100 = vmatpush.msra.mxu0 %v87_v5  ;;  %v130_v24 = vld [vmem:[%s1502_s28 + $0x40] sm:$0xff]  ;;  %v125_v29 = vld [vmem:[%s1502_s28 + $0x18] sm:$0xff]  ;;  %v124_v30 = vld [vmem:[%s1502_s28 + $0x10] sm:$0xff] }
  0x19   :  { %146 = vmatpush.msra.mxu1 %v133_v11  ;;  %v126_v28 = vld [vmem:[%s1502_s28 + $0x20] sm:$0xff]  ;;  %v123_v31 = vld [vmem:[%s1502_s28 + $0x8] sm:$0xff]  ;;  %v266_v0 = vld [vmem:[%s1473_s9 + $0xd0] sm:$0xff] }
  0x1a   :  { %101 = vmatpush.msra.mxu0 %v86_v8  ;;  %v122_v32 = vld [vmem:[%s1502_s28] sm:$0xff]  ;;  %v267_v1 = vld [vmem:[%s1473_s9 + $0xd8] sm:$0xff]  ;;  %v265_v5 = vld [vmem:[%s1473_s9 + $0xc8] sm:$0xff]  ;;  %274 = vmatpush.msra.mxu3 %v266_v0 }
  0x1b   :  { %147 = vmatpush.msra.mxu1 %v132_v13  ;;  %v651_v40 = vld [vmem:[%s1505_s6] ss:$0 sm:$0xff]  ;;  %v262_v8 = vld [vmem:[%s1473_s9 + $0xb0] sm:$0xff]  ;;  %v263_v9 = vld [vmem:[%s1473_s9 + $0xb8] sm:$0xff] }
  0x1c   :  { %102 = vmatpush.msra.mxu0 %v85_v10  ;;  %v183_v33 = vld [vmem:[%s1504_s24 + $0x78] sm:$0xff]  ;;  %v182_v34 = vld [vmem:[%s1504_s24 + $0x70] sm:$0xff]  ;;  %v181_v35 = vld [vmem:[%s1504_s24 + $0x68] sm:$0xff] }
  0x1d   :  { %148 = vmatpush.msra.mxu1 %v131_v15  ;;  %188 = vmatpush.msra.mxu2 %v183_v33  ;;  %v180_v36 = vld [vmem:[%s1504_s24 + $0x60] sm:$0xff]  ;;  %v179_v37 = vld [vmem:[%s1504_s24 + $0x58] sm:$0xff]  ;;  %v178_v38 = vld [vmem:[%s1504_s24 + $0x50] sm:$0xff] }
  0x1e   :  { %103 = vmatpush.msra.mxu0 %v84_v12  ;;  %v177_v39 = vld [vmem:[%s1504_s24 + $0x48] sm:$0xff]  ;;  %v176_v48 = vld [vmem:[%s1504_s24 + $0x40] sm:$0xff]  ;;  %v175_v49 = vld [vmem:[%s1504_s24 + $0x38] sm:$0xff] }
  0x1f   :  { %149 = vmatpush.msra.mxu1 %v130_v24  ;;  %189 = vmatpush.msra.mxu2 %v182_v34  ;;  %v174_v50 = vld [vmem:[%s1504_s24 + $0x30] sm:$0xff]  ;;  %v173_v51 = vld [vmem:[%s1504_s24 + $0x28] sm:$0xff]  ;;  %v172_v52 = vld [vmem:[%s1504_s24 + $0x20] sm:$0xff] }
  0x20   :  { %104 = vmatpush.msra.mxu0 %v83_v14  ;;  %v171_v53 = vld [vmem:[%s1504_s24 + $0x18] sm:$0xff]  ;;  %v170_v54 = vld [vmem:[%s1504_s24 + $0x10] sm:$0xff]  ;;  %v169_v55 = vld [vmem:[%s1504_s24 + $0x8] sm:$0xff] }
  0x21   :  { %150 = vmatpush.msra.mxu1 %v129_v25  ;;  %190 = vmatpush.msra.mxu2 %v181_v35  ;;  %v168_v56 = vld [vmem:[%s1504_s24] sm:$0xff]  ;;  %v239_v57 = vld [vmem:[%s1506_s8 + $0xf8] sm:$0xff]  ;;  %v237_v58 = vld [vmem:[%s1506_s8 + $0xe8] sm:$0xff]  ;;  %s1508_s24 = sld [smem:[#allocation8_spill]] }
  0x22   :  { %105 = vmatpush.msra.mxu0 %v82_v16  ;;  %v235_v61 = vld [vmem:[%s1506_s8 + $0xd8] sm:$0xff]  ;;  %v233_v2 = vld [vmem:[%s1506_s8 + $0xc8] sm:$0xff]  ;;  %v238_v3 = vld [vmem:[%s1506_s8 + $0xf0] sm:$0xff] }
  0x23   :  { %151 = vmatpush.msra.mxu1 %v128_v26  ;;  %191 = vmatpush.msra.mxu2 %v180_v36  ;;  %v264_v4 = vld [vmem:[%s1473_s9 + $0xc0] sm:$0xff]  ;;  %v231_v6 = vld [vmem:[%s1506_s8 + $0xb8] sm:$0xff]  ;;  %v234_v10 = vld [vmem:[%s1506_s8 + $0xd0] sm:$0xff] }
  0x24   :  { %106 = vmatpush.msra.mxu0 %v81_v17  ;;  %v236_v7 = vld [vmem:[%s1506_s8 + $0xe0] sm:$0xff]  ;;  %v229_v11 = vld [vmem:[%s1506_s8 + $0xa8] sm:$0xff]  ;;  %275 = vmatpush.msra.mxu3 %v264_v4  ;;  %v227_v15 = vld [vmem:[%s1506_s8 + $0x98] sm:$0xff] }
  0x25   :  { %152 = vmatpush.msra.mxu1 %v127_v27  ;;  %192 = vmatpush.msra.mxu2 %v179_v37  ;;  %v232_v12 = vld [vmem:[%s1506_s8 + $0xc0] sm:$0xff]  ;;  %v261_v14 = vld [vmem:[%s1473_s9 + $0xa8] sm:$0xff]  ;;  %v230_v16 = vld [vmem:[%s1506_s8 + $0xb0] sm:$0xff] }
  0x26   :  { %107 = vmatpush.msra.mxu0 %v80_v18  ;;  %v260_v13 = vld [vmem:[%s1473_s9 + $0xa0] sm:$0xff]  ;;  %276 = vmatpush.msra.mxu3 %v262_v8  ;;  %v258_v17 = vld [vmem:[%s1473_s9 + $0x90] sm:$0xff]  ;;  %v259_v18 = vld [vmem:[%s1473_s9 + $0x98] sm:$0xff] }
  0x27   :  { %153 = vmatpush.msra.mxu1 %v126_v28  ;;  %193 = vmatpush.msra.mxu2 %v178_v38  ;;  %v223_v24 = vld [vmem:[%s1506_s8 + $0x78] sm:$0xff]  ;;  %v226_v25 = vld [vmem:[%s1506_s8 + $0x90] sm:$0xff]  ;;  %v253_v33 = vld [vmem:[%s1473_s9 + $0x68] sm:$0xff] }
  0x28   :  { %108 = vmatpush.msra.mxu0 %v79_v19  ;;  %v652_v19 = vld [vmem:[%s1507_s3] ss:$0 sm:$0xff]  ;;  %277 = vmatpush.msra.mxu3 %v260_v13  ;;  %v254_v27 = vld [vmem:[%s1473_s9 + $0x70] sm:$0xff]  ;;  %v255_v28 = vld [vmem:[%s1473_s9 + $0x78] sm:$0xff] }
  0x29   :  { %154 = vmatpush.msra.mxu1 %v125_v29  ;;  %194 = vmatpush.msra.mxu2 %v177_v39  ;;  %v219_v35 = vld [vmem:[%s1506_s8 + $0x58] sm:$0xff]  ;;  %v222_v36 = vld [vmem:[%s1506_s8 + $0x70] sm:$0xff]  ;;  %v216_v59 = vld [vmem:[%s1506_s8 + $0x40] sm:$0xff] }
  0x2a   :  { %109 = vmatpush.msra.mxu0 %v78_v20  ;;  %v225_v20 = vld [vmem:[%s1506_s8 + $0x88] sm:$0xff]  ;;  %278 = vmatpush.msra.mxu3 %v258_v17  ;;  %v250_v37 = vld [vmem:[%s1473_s9 + $0x50] sm:$0xff]  ;;  %v251_v38 = vld [vmem:[%s1473_s9 + $0x58] sm:$0xff] }
  0x2b   :  { %155 = vmatpush.msra.mxu1 %v124_v30  ;;  %195 = vmatpush.msra.mxu2 %v176_v48  ;;  %v221_v30 = vld [vmem:[%s1506_s8 + $0x68] sm:$0xff]  ;;  %v214_v62 = vld [vmem:[%s1506_s8 + $0x30] sm:$0xff]  ;;  %v516_v8 = vld [vmem:[%s1475_s17 + $0x60] sm:$0xff] }
  0x2c   :  { %110 = vmatpush.msra.mxu0 %v77_v21  ;;  %v228_v21 = vld [vmem:[%s1506_s8 + $0xa0] sm:$0xff]  ;;  %v213_v48 = vld [vmem:[%s1506_s8 + $0x28] sm:$0xff]  ;;  %v210_v0 = vld [vmem:[%s1506_s8 + $0x10] sm:$0xff] }
  0x2d   :  { %156 = vmatpush.msra.mxu1 %v123_v31  ;;  %196 = vmatpush.msra.mxu2 %v175_v49  ;;  %v224_v31 = vld [vmem:[%s1506_s8 + $0x80] sm:$0xff]  ;;  %v386_v4 = vld [vmem:[%s1476_s11 + $0x70] sm:$0xff] }
  0x2e   :  { %111 = vmatpush.msra.mxu0 %v76_v22  ;;  %v256_v22 = vld [vmem:[%s1473_s9 + $0x80] sm:$0xff] }
  0x2f   :  { %112 = vmatmul.f32.vlgmr.msra.gmra.mxu0 %v75_v23  ;;  %157 = vmatpush.msra.mxu1 %v122_v32  ;;  %v257_v23 = vld [vmem:[%s1473_s9 + $0x88] sm:$0xff]  ;;  %v252_v32 = vld [vmem:[%s1473_s9 + $0x60] sm:$0xff] }
  0x30   :  { %197 = vmatpush.msra.mxu2 %v174_v50  ;;  %292 = vmatpush.msrb.mxu0 %v271_v60  ;;  %v244_v49 = vld [vmem:[%s1473_s9 + $0x20] sm:$0xff]  ;;  %v245_v50 = vld [vmem:[%s1473_s9 + $0x28] sm:$0xff] }
  0x31   :  { %312 = vmatpush.msrb.mxu1 %v238_v3  ;;  %279 = vmatpush.msra.mxu3 %v256_v22  ;;  %v240_v60 = vld [vmem:[%s1473_s9] sm:$0xff]  ;;  %v387_v3 = vld [vmem:[%s1476_s11 + $0x78] sm:$0xff] }
  0x32   :  { %198 = vmatpush.msra.mxu2 %v173_v51  ;;  %293 = vmatpush.msrb.mxu0 %v269_v63  ;;  %v211_v51 = vld [vmem:[%s1506_s8 + $0x18] sm:$0xff]  ;;  %v212_v63 = vld [vmem:[%s1506_s8 + $0x20] sm:$0xff] }
  0x33   :  { %313 = vmatpush.msrb.mxu1 %v236_v7  ;;  %280 = vmatpush.msra.mxu3 %v254_v27  ;;  %v385_v7 = vld [vmem:[%s1476_s11 + $0x68] sm:$0xff]  ;;  %v512_v17 = vld [vmem:[%s1475_s17 + $0x40] sm:$0xff]  ;;  %v507_v27 = vld [vmem:[%s1475_s17 + $0x18] sm:$0xff] }
  0x34   :  { %199 = vmatpush.msra.mxu2 %v172_v52  ;;  %294 = vmatpush.msrb.mxu0 %v267_v1  ;;  %v519_v1 = vld [vmem:[%s1475_s17 + $0x78] sm:$0xff]  ;;  %v380_v22 = vld [vmem:[%s1476_s11 + $0x40] sm:$0xff] }
  0x35   :  { %314 = vmatpush.msrb.mxu1 %v234_v10  ;;  %281 = vmatpush.msra.mxu3 %v252_v32  ;;  %v514_v10 = vld [vmem:[%s1475_s17 + $0x50] sm:$0xff]  ;;  %v375_v32 = vld [vmem:[%s1476_s11 + $0x18] sm:$0xff] }
  0x36   :  { %200 = vmatpush.msra.mxu2 %v171_v53  ;;  %295 = vmatpush.msrb.mxu0 %v265_v5  ;;  %v209_v53 = vld [vmem:[%s1506_s8 + $0x8] sm:$0xff]  ;;  %v208_v5 = vld [vmem:[%s1506_s8] sm:$0xff] }
  0x37   :  { %315 = vmatpush.msrb.mxu1 %v232_v12  ;;  %282 = vmatpush.msra.mxu3 %v250_v37  ;;  %v565_v37 = vld [vmem:[%s1479_s19 + $0x78] sm:$0xff] }
  0x38   :  { %201 = vmatpush.msra.mxu2 %v170_v54  ;;  %296 = vmatpush.msrb.mxu0 %v263_v9  ;;  %v515_v9 = vld [vmem:[%s1475_s17 + $0x58] sm:$0xff] }
  0x39   :  { %316 = vmatpush.msrb.mxu1 %v230_v16  ;;  %v383_v16 = vld [vmem:[%s1476_s11 + $0x58] sm:$0xff] }
  0x3a   :  { %202 = vmatpush.msra.mxu2 %v169_v55  ;;  %297 = vmatpush.msrb.mxu0 %v261_v14  ;;  %v384_v14 = vld [vmem:[%s1476_s11 + $0x60] sm:$0xff] }
  0x3b   :  { %317 = vmatpush.msrb.mxu1 %v228_v21  ;;  %v510_v21 = vld [vmem:[%s1475_s17 + $0x30] sm:$0xff] }
  0x3c   :  { %203 = vmatpush.msra.mxu2 %v168_v56  ;;  %298 = vmatpush.msrb.mxu0 %v259_v18  ;;  %v74_v56 = vld [vmem:[%s1474_s0] sm:$0xff]  ;;  %v382_v18 = vld [vmem:[%s1476_s11 + $0x50] sm:$0xff] }
  0x3d   :  { %318 = vmatpush.msrb.mxu1 %v226_v25  ;;  %v508_v25 = vld [vmem:[%s1475_s17 + $0x20] sm:$0xff] }
  0x3e   :  { %332 = vmatpush.msrb.mxu2 %v239_v57  ;;  %299 = vmatpush.msrb.mxu0 %v257_v23  ;;  %v242_v57 = vld [vmem:[%s1473_s9 + $0x10] sm:$0xff]  ;;  %v509_v23 = vld [vmem:[%s1475_s17 + $0x28] sm:$0xff] }
  0x3f   :  { %319 = vmatpush.msrb.mxu1 %v224_v31  ;;  %v505_v31 = vld [vmem:[%s1475_s17 + $0x8] sm:$0xff] }
  0x40   :  { %333 = vmatpush.msrb.mxu2 %v237_v58  ;;  %300 = vmatpush.msrb.mxu0 %v255_v28  ;;  %v243_v58 = vld [vmem:[%s1473_s9 + $0x18] sm:$0xff]  ;;  %v377_v28 = vld [vmem:[%s1476_s11 + $0x28] sm:$0xff] }
  0x41   :  { %320 = vmatpush.msrb.mxu1 %v222_v36  ;;  %v372_v36 = vld [vmem:[%s1476_s11] sm:$0xff] }
  0x42   :  { %334 = vmatpush.msrb.mxu2 %v235_v61  ;;  %301 = vmatpush.msrb.mxu0 %v253_v33  ;;  %v241_v61 = vld [vmem:[%s1473_s9 + $0x8] sm:$0xff]  ;;  %v504_v33 = vld [vmem:[%s1475_s17] sm:$0xff] }
  0x44   :  { %335 = vmatpush.msrb.mxu2 %v233_v2  ;;  %302 = vmatpush.msrb.mxu0 %v251_v38  ;;  %v518_v2 = vld [vmem:[%s1475_s17 + $0x70] sm:$0xff] }
  0x45   :  { %v564_v38 = vld [vmem:[%s1479_s19 + $0x70] sm:$0xff] }
  0x46   :  { %336 = vmatpush.msrb.mxu2 %v231_v6  ;;  %v517_v6 = vld [vmem:[%s1475_s17 + $0x68] sm:$0xff] }
  0x48   :  { %337 = vmatpush.msrb.mxu2 %v229_v11  ;;  %v653_v11 = vld [vmem:[%s1508_s24] ss:$0 sm:$0xff] }
  0x4a   :  { %338 = vmatpush.msrb.mxu2 %v227_v15  ;;  %v513_v15 = vld [vmem:[%s1475_s17 + $0x48] sm:$0xff] }
  0x4c   :  { %339 = vmatpush.msrb.mxu2 %v225_v20  ;;  %v381_v20 = vld [vmem:[%s1476_s11 + $0x48] sm:$0xff] }
  0x4e   :  { %340 = vmatpush.msrb.mxu2 %v223_v24  ;;  %v379_v24 = vld [vmem:[%s1476_s11 + $0x38] sm:$0xff] }
  0x50   :  { %341 = vmatpush.msrb.mxu2 %v221_v30  ;;  %v376_v30 = vld [vmem:[%s1476_s11 + $0x20] sm:$0xff] }
  0x52   :  { %342 = vmatpush.msrb.mxu2 %v219_v35  ;;  %v373_v35 = vld [vmem:[%s1476_s11 + $0x8] sm:$0xff] }
  0xac   :  { %v113_v41 = vpop.f32.mrf.mxu0 }
  0xad   :  { %v114_v42 = vadd.f32 %v651_v40, %v113_v41  ;;  %v217_v40 = vld [vmem:[%s1506_s8 + $0x48] sm:$0xff]  ;;  %v220_v41 = vld [vmem:[%s1506_s8 + $0x60] sm:$0xff] }
  0xae   :  { %343 = vmatpush.msrb.mxu2 %v217_v40  ;;  %321 = vmatpush.msrb.mxu1 %v220_v41  ;;  %v432_v40 = vld [vmem:[%s1480_s13 + $0x70] sm:$0xff]  ;;  %v563_v41 = vld [vmem:[%s1479_s19 + $0x68] sm:$0xff] }
  0xaf   :  { %v117_v43 = vmin.f32 %v114_v42, 0.0  ;;  %vm116_vm0 = vcmp.gt.f32.partialorder %v114_v42, 0.0 }
  0xb1   :  { %v118_v44 = vmul.f32 1.442695, %v117_v43  ;;  %v249_v43 = vld [vmem:[%s1473_s9 + $0x48] sm:$0xff] }
  0xb2   :  { %303 = vmatpush.msrb.mxu0 %v249_v43  ;;  %v431_v43 = vld [vmem:[%s1480_s13 + $0x68] sm:$0xff] }
  0xb3   :  { %660 = vpow2.f32 %v118_v44  ;;  %v215_v44 = vld [vmem:[%s1506_s8 + $0x38] sm:$0xff] }
  0xb4   :  { %344 = vmatpush.msrb.mxu2 %v215_v44  ;;  %v562_v44 = vld [vmem:[%s1479_s19 + $0x60] sm:$0xff] }
  0xb6   :  { %345 = vmatpush.msrb.mxu2 %v213_v48  ;;  %v561_v48 = vld [vmem:[%s1479_s19 + $0x58] sm:$0xff] }
  0xb8   :  { %346 = vmatpush.msrb.mxu2 %v211_v51 }
  0xb9   :  { %v661_v45 = vpop.eup %660 }
  0xba   :  { %v643_v46 = vadd.f32 -1.0, %v661_v45  ;;  %v218_v45 = vld [vmem:[%s1506_s8 + $0x50] sm:$0xff]  ;;  %347 = vmatpush.msrb.mxu2 %v209_v53 }
  0xbb   :  { %322 = vmatpush.msrb.mxu1 %v218_v45 }
  0xbc   :  { %v121_v47 = vsel %vm116_vm0, %v114_v42, %v643_v46  ;;  %v248_v42 = vld [vmem:[%s1473_s9 + $0x40] sm:$0xff]  ;;  %v246_v46 = vld [vmem:[%s1473_s9 + $0x30] sm:$0xff] }
  0xbd   :  { %158 = vmatmul.f32.vlgmr.msra.gmra.mxu1 %v121_v47  ;;  %v247_v47 = vld [vmem:[%s1473_s9 + $0x38] sm:$0xff]  ;;  %283 = vmatpush.msra.mxu3 %v248_v42  ;;  %v352_v42 = vld [vmem:[%s1481_s10] sm:$0x3] }
  0xbe   :  { %304 = vmatpush.msrb.mxu0 %v247_v47  ;;  %323 = vmatpush.msrb.mxu1 %v216_v59  ;;  %v355_v47 = vperm.slane %v352_v42, 1 }
  0xbf   :  { %284 = vmatpush.msra.mxu3 %v246_v46  ;;  %v430_v46 = vld [vmem:[%s1480_s13 + $0x60] sm:$0xff] }
  0xc0   :  { %305 = vmatpush.msrb.mxu0 %v245_v50  ;;  %324 = vmatpush.msrb.mxu1 %v214_v62  ;;  %v429_v50 = vld [vmem:[%s1480_s13 + $0x58] sm:$0xff] }
  0xc1   :  { %285 = vmatpush.msra.mxu3 %v244_v49 }
  0xc2   :  { %306 = vmatpush.msrb.mxu0 %v243_v58  ;;  %325 = vmatpush.msrb.mxu1 %v212_v63 }
  0xc3   :  { %286 = vmatpush.msra.mxu3 %v242_v57  ;;  %v354_v57 = vperm.slane %v352_v42, 0  ;;  %v605_v42 = vld [vmem:[%s1485_s21 + $0x48] sm:$0xff] }
  0xc4   :  { %307 = vmatpush.msrb.mxu0 %v241_v61  ;;  %326 = vmatpush.msrb.mxu1 %v210_v0 }
  0xc5   :  { %287 = vmatpush.msra.mxu3 %v240_v60 }
  0xc6   :  { %327 = vmatpush.msrb.mxu1 %v208_v5 }
  0xc7   :  { %392 = vmatpush.msrb.mxu3 %v387_v3  ;;  %328 = vmatmul.f32.vlgmr.msrb.gmra.mxu1 %v74_v56 }
  0xc9   :  { %393 = vmatpush.msrb.mxu3 %v386_v4 }
  0xcb   :  { %394 = vmatpush.msrb.mxu3 %v385_v7  ;;  %v428_v7 = vld [vmem:[%s1480_s13 + $0x50] sm:$0xff] }
  0xcd   :  { %395 = vmatpush.msrb.mxu3 %v384_v14  ;;  %v554_v14 = vld [vmem:[%s1479_s19 + $0x20] sm:$0xff] }
  0xcf   :  { %396 = vmatpush.msrb.mxu3 %v383_v16  ;;  %v553_v16 = vld [vmem:[%s1479_s19 + $0x18] sm:$0xff] }
  0xd1   :  { %397 = vmatpush.msrb.mxu3 %v382_v18  ;;  %v552_v18 = vld [vmem:[%s1479_s19 + $0x10] sm:$0xff] }
  0xd3   :  { %398 = vmatpush.msrb.mxu3 %v381_v20  ;;  %v551_v20 = vld [vmem:[%s1479_s19 + $0x8] sm:$0xff] }
  0xd5   :  { %399 = vmatpush.msrb.mxu3 %v380_v22  ;;  %v550_v22 = vld [vmem:[%s1479_s19] sm:$0xff] }
  0xd7   :  { %400 = vmatpush.msrb.mxu3 %v379_v24  ;;  %v419_v24 = vld [vmem:[%s1480_s13 + $0x8] sm:$0xff] }
 0x13a   :  { %v159_v26 = vpop.f32.mrf.mxu1 }
 0x13b   :  { %v160_v29 = vadd.f32 %v652_v19, %v159_v26  ;;  %v511_v19 = vld [vmem:[%s1475_s17 + $0x38] sm:$0xff]  ;;  %v378_v26 = vld [vmem:[%s1476_s11 + $0x30] sm:$0xff] }
 0x13c   :  { %401 = vmatpush.msrb.mxu3 %v378_v26  ;;  %v479_v26 = vld [vmem:[%s1484_s15 + $0x78] sm:$0xff] }
 0x13d   :  { %v163_v34 = vmin.f32 %v160_v29, 0.0  ;;  %vm162_vm1 = vcmp.gt.f32.partialorder %v160_v29, 0.0  ;;  %484 = vmatpush.msra.mxu1 %v479_v26  ;;  %v658_v26 = vld [vmem:[%s1487_s16] ss:$0 sm:$0xff] }
 0x13e   :  { %402 = vmatpush.msrb.mxu3 %v377_v28  ;;  %v478_v28 = vld [vmem:[%s1484_s15 + $0x70] sm:$0xff] }
 0x13f   :  { %v164_v39 = vmul.f32 1.442695, %v163_v34  ;;  %v374_v34 = vld [vmem:[%s1476_s11 + $0x10] sm:$0xff]  ;;  %485 = vmatpush.msra.mxu1 %v478_v28 }
 0x140   :  { %403 = vmatpush.msrb.mxu3 %v376_v30  ;;  %v477_v30 = vld [vmem:[%s1484_s15 + $0x68] sm:$0xff] }
 0x141   :  { %662 = vpow2.f32 %v164_v39  ;;  %v433_v39 = vld [vmem:[%s1480_s13 + $0x78] sm:$0xff]  ;;  %486 = vmatpush.msra.mxu1 %v477_v30 }
 0x142   :  { %404 = vmatpush.msrb.mxu3 %v375_v32  ;;  %438 = vmatpush.msra.mxu0 %v433_v39  ;;  %v476_v32 = vld [vmem:[%s1484_s15 + $0x60] sm:$0xff] }
 0x143   :  { %487 = vmatpush.msra.mxu1 %v476_v32 }
 0x144   :  { %405 = vmatpush.msrb.mxu3 %v374_v34  ;;  %439 = vmatpush.msra.mxu0 %v432_v40  ;;  %v654_v34 = vld [vmem:[%s1478_s18] ss:$0 sm:$0xff] }
 0x146   :  { %406 = vmatpush.msrb.mxu3 %v373_v35  ;;  %440 = vmatpush.msra.mxu0 %v431_v43  ;;  %v475_v35 = vld [vmem:[%s1484_s15 + $0x58] sm:$0xff] }
 0x147   :  { %v663_v52 = vpop.eup %662  ;;  %488 = vmatpush.msra.mxu1 %v475_v35 }
 0x148   :  { %v644_v54 = vadd.f32 -1.0, %v663_v52  ;;  %407 = vmatpush.msrb.mxu3 %v372_v36  ;;  %v560_v52 = vld [vmem:[%s1479_s19 + $0x50] sm:$0xff]  ;;  %441 = vmatpush.msra.mxu0 %v430_v46  ;;  %v607_v36 = vld [vmem:[%s1485_s21 + $0x58] sm:$0xff] }
 0x14a   :  { %v167_v55 = vsel %vm162_vm1, %v160_v29, %v644_v54  ;;  %v506_v29 = vld [vmem:[%s1475_s17 + $0x10] sm:$0xff]  ;;  %v559_v54 = vld [vmem:[%s1479_s19 + $0x48] sm:$0xff]  ;;  %442 = vmatpush.msra.mxu0 %v429_v50 }
 0x14b   :  { %204 = vmatmul.f32.vlgmr.msra.gmra.mxu2 %v167_v55  ;;  %v329_v55 = vpop.f32.mrf.mxu1 }
 0x14c   :  { %524 = vmatpush.msra.mxu2 %v519_v1  ;;  %443 = vmatpush.msra.mxu0 %v428_v7  ;;  %v597_v7 = vld [vmem:[%s1485_s21 + $0x8] sm:$0xff] }
 0x14e   :  { %525 = vmatpush.msra.mxu2 %v518_v2 }
 0x150   :  { %526 = vmatpush.msra.mxu2 %v517_v6  ;;  %v558_v6 = vld [vmem:[%s1479_s19 + $0x40] sm:$0xff] }
 0x152   :  { %527 = vmatpush.msra.mxu2 %v516_v8  ;;  %v557_v8 = vld [vmem:[%s1479_s19 + $0x38] sm:$0xff] }
 0x153   :  { %348 = vmatmul.f32.vlgmr.msrb.gmra.mxu2 %v74_v56 }
 0x154   :  { %528 = vmatpush.msra.mxu2 %v515_v9  ;;  %v427_v9 = vld [vmem:[%s1480_s13 + $0x48] sm:$0xff] }
 0x155   :  { %444 = vmatpush.msra.mxu0 %v427_v9  ;;  %v596_v9 = vld [vmem:[%s1485_s21] sm:$0xff] }
 0x156   :  { %529 = vmatpush.msra.mxu2 %v514_v10  ;;  %v556_v10 = vld [vmem:[%s1479_s19 + $0x30] sm:$0xff] }
 0x158   :  { %530 = vmatpush.msra.mxu2 %v513_v15  ;;  %v424_v15 = vld [vmem:[%s1480_s13 + $0x30] sm:$0xff] }
 0x15a   :  { %531 = vmatpush.msra.mxu2 %v512_v17  ;;  %v423_v17 = vld [vmem:[%s1480_s13 + $0x28] sm:$0xff] }
 0x15c   :  { %532 = vmatpush.msra.mxu2 %v511_v19  ;;  %v422_v19 = vld [vmem:[%s1480_s13 + $0x20] sm:$0xff] }
 0x15e   :  { %533 = vmatpush.msra.mxu2 %v510_v21  ;;  %v421_v21 = vld [vmem:[%s1480_s13 + $0x18] sm:$0xff] }
 0x160   :  { %534 = vmatpush.msra.mxu2 %v509_v23  ;;  %v420_v23 = vld [vmem:[%s1480_s13 + $0x10] sm:$0xff] }
 0x162   :  { %535 = vmatpush.msra.mxu2 %v508_v25  ;;  %v418_v25 = vld [vmem:[%s1480_s13] sm:$0xff] }
 0x164   :  { %536 = vmatpush.msra.mxu2 %v507_v27  ;;  %v611_v27 = vld [vmem:[%s1485_s21 + $0x78] sm:$0xff] }
 0x166   :  { %537 = vmatpush.msra.mxu2 %v506_v29  ;;  %v610_v29 = vld [vmem:[%s1485_s21 + $0x70] sm:$0xff] }
 0x168   :  { %538 = vmatpush.msra.mxu2 %v505_v31  ;;  %v609_v31 = vld [vmem:[%s1485_s21 + $0x68] sm:$0xff] }
 0x16a   :  { %539 = vmatpush.msra.mxu2 %v504_v33  ;;  %v608_v33 = vld [vmem:[%s1485_s21 + $0x60] sm:$0xff] }
 0x1ce   :  { %v205_v12 = vpop.f32.mrf.mxu2 }
 0x1cf   :  { %v206_v13 = vadd.f32 %v653_v11, %v205_v12  ;;  %v426_v11 = vld [vmem:[%s1480_s13 + $0x40] sm:$0xff]  ;;  %v555_v12 = vld [vmem:[%s1479_s19 + $0x28] sm:$0xff] }
 0x1d0   :  { %445 = vmatpush.msra.mxu0 %v426_v11  ;;  %v657_v11 = vld [vmem:[%s1486_s20] ss:$0 sm:$0xff] }
 0x1d1   :  { %288 = vmatmul.f32.vlgmr.msra.gmra.mxu3 %v206_v13  ;;  %308 = vmatmul.f32.vlgmr.msrb.gmra.mxu0 %v206_v13  ;;  %638 = vst [vmem:[%s1477_s23 + $0x10] sm:$0xff] %v206_v13  ;;  %v425_v13 = vld [vmem:[%s1480_s13 + $0x38] sm:$0xff] }
 0x1d2   :  { %570 = vmatpush.msra.mxu3 %v565_v37  ;;  %446 = vmatpush.msra.mxu0 %v425_v13  ;;  %v474_v37 = vld [vmem:[%s1484_s15 + $0x50] sm:$0xff] }
 0x1d3   :  { %489 = vmatpush.msra.mxu1 %v474_v37 }
 0x1d4   :  { %571 = vmatpush.msra.mxu3 %v564_v38  ;;  %447 = vmatpush.msra.mxu0 %v424_v15  ;;  %v606_v38 = vld [vmem:[%s1485_s21 + $0x50] sm:$0xff] }
 0x1d6   :  { %v349_v45 = vpop.f32.mrf.mxu2  ;;  %572 = vmatpush.msra.mxu3 %v563_v41  ;;  %448 = vmatpush.msra.mxu0 %v423_v17  ;;  %v473_v41 = vld [vmem:[%s1484_s15 + $0x48] sm:$0xff] }
 0x1d7   :  { %490 = vmatpush.msra.mxu1 %v473_v41 }
 0x1d8   :  { %573 = vmatpush.msra.mxu3 %v562_v44  ;;  %449 = vmatpush.msra.mxu0 %v422_v19  ;;  %v655_v44 = vld [vmem:[%s1482_s12] ss:$0 sm:$0xff] }
 0x1da   :  { %574 = vmatpush.msra.mxu3 %v561_v48  ;;  %450 = vmatpush.msra.mxu0 %v421_v21 }
 0x1dc   :  { %575 = vmatpush.msra.mxu3 %v560_v52  ;;  %451 = vmatpush.msra.mxu0 %v420_v23 }
 0x1de   :  { %576 = vmatpush.msra.mxu3 %v559_v54  ;;  %452 = vmatpush.msra.mxu0 %v419_v24 }
 0x1e0   :  { %577 = vmatpush.msra.mxu3 %v558_v6  ;;  %453 = vmatpush.msra.mxu0 %v418_v25  ;;  %v465_v6 = vld [vmem:[%s1484_s15 + $0x8] sm:$0xff] }
 0x1e2   :  { %578 = vmatpush.msra.mxu3 %v557_v8  ;;  %616 = vmatpush.msrb.mxu0 %v611_v27  ;;  %v464_v8 = vld [vmem:[%s1484_s15] sm:$0xff] }
 0x1e3   :  { %v659_v27 = vld [vmem:[%s1488_s22] ss:$0 sm:$0xff] }
 0x1e4   :  { %579 = vmatpush.msra.mxu3 %v556_v10  ;;  %617 = vmatpush.msrb.mxu0 %v610_v29  ;;  %v656_v10 = vld [vmem:[%s1483_s14] ss:$0 sm:$0xff] }
 0x1e6   :  { %580 = vmatpush.msra.mxu3 %v555_v12  ;;  %618 = vmatpush.msrb.mxu0 %v609_v31 }
 0x1e8   :  { %581 = vmatpush.msra.mxu3 %v554_v14  ;;  %619 = vmatpush.msrb.mxu0 %v608_v33 }
 0x1ea   :  { %582 = vmatpush.msra.mxu3 %v553_v16  ;;  %620 = vmatpush.msrb.mxu0 %v607_v36 }
 0x1ec   :  { %583 = vmatpush.msra.mxu3 %v552_v18  ;;  %621 = vmatpush.msrb.mxu0 %v606_v38 }
 0x1ee   :  { %584 = vmatpush.msra.mxu3 %v551_v20  ;;  %622 = vmatpush.msrb.mxu0 %v605_v42 }
 0x1f0   :  { %585 = vmatpush.msra.mxu3 %v550_v22 }
 0x24e   :  { %v309_v49 = vpop.f32.mrf.mxu0 }
 0x24f   :  { %v350_v51 = vadd.f32 %v349_v45, %v309_v49 }
 0x251   :  { %v359_v53 = vadd.f32 %v355_v47, %v350_v51 }
 0x253   :  { %v363_v56 = vmin.f32 %v359_v53, 0.0  ;;  %vm361_vm2 = vcmp.gt.f32.partialorder %v359_v53, 0.0 }
 0x254   :  { %v289_v58 = vpop.f32.mrf.mxu3 }
 0x255   :  { %v366_v59 = vmul.f32 1.442695, %v363_v56  ;;  %v330_v60 = vadd.f32 %v329_v55, %v289_v58  ;;  %v472_v56 = vld [vmem:[%s1484_s15 + $0x40] sm:$0xff]  ;;  %v471_v58 = vld [vmem:[%s1484_s15 + $0x38] sm:$0xff] }
 0x256   :  { %491 = vmatpush.msra.mxu1 %v472_v56 }
 0x257   :  { %664 = vpow2.f32 %v366_v59  ;;  %v358_v61 = vadd.f32 %v354_v57, %v330_v60  ;;  %v604_v57 = vld [vmem:[%s1485_s21 + $0x40] sm:$0xff]  ;;  %v603_v59 = vld [vmem:[%s1485_s21 + $0x38] sm:$0xff]  ;;  %v470_v60 = vld [vmem:[%s1484_s15 + $0x30] sm:$0xff] }
 0x258   :  { %623 = vmatpush.msrb.mxu0 %v604_v57  ;;  %492 = vmatpush.msra.mxu1 %v471_v58 }
 0x259   :  { %v362_v62 = vmin.f32 %v358_v61, 0.0  ;;  %vm360_vm3 = vcmp.gt.f32.partialorder %v358_v61, 0.0 }
 0x25a   :  { %624 = vmatpush.msrb.mxu0 %v603_v59  ;;  %493 = vmatpush.msra.mxu1 %v470_v60 }
 0x25b   :  { %v364_v63 = vmul.f32 1.442695, %v362_v62  ;;  %v469_v62 = vld [vmem:[%s1484_s15 + $0x28] sm:$0xff] }
 0x25c   :  { %494 = vmatpush.msra.mxu1 %v469_v62 }
 0x25d   :  { %v665_v0 = vpop.eup %664  ;;  %666 = vpow2.f32 %v364_v63  ;;  %v601_v63 = vld [vmem:[%s1485_s21 + $0x28] sm:$0xff] }
 0x25e   :  { %v646_v1 = vadd.f32 -1.0, %v665_v0  ;;  %v468_v0 = vld [vmem:[%s1484_s15 + $0x20] sm:$0xff] }
 0x25f   :  { %495 = vmatpush.msra.mxu1 %v468_v0 }
 0x260   :  { %v371_v2 = vsel %vm361_vm2, %v359_v53, %v646_v1  ;;  %v600_v1 = vld [vmem:[%s1485_s21 + $0x20] sm:$0xff] }
 0x261   :  { %540 = vmatmul.f32.vlgmr.msra.gmra.mxu2 %v371_v2  ;;  %v467_v2 = vld [vmem:[%s1484_s15 + $0x18] sm:$0xff] }
 0x262   :  { %496 = vmatpush.msra.mxu1 %v467_v2 }
 0x263   :  { %v667_v3 = vpop.eup %666 }
 0x264   :  { %v645_v4 = vadd.f32 -1.0, %v667_v3  ;;  %v599_v3 = vld [vmem:[%s1485_s21 + $0x18] sm:$0xff] }
 0x266   :  { %v370_v5 = vsel %vm360_vm3, %v358_v61, %v645_v4  ;;  %v602_v61 = vld [vmem:[%s1485_s21 + $0x30] sm:$0xff] }
 0x267   :  { %408 = vmatmul.f32.vlgmr.msrb.gmra.mxu3 %v370_v5  ;;  %625 = vmatpush.msrb.mxu0 %v602_v61  ;;  %v466_v4 = vld [vmem:[%s1484_s15 + $0x10] sm:$0xff] }
 0x268   :  { %v598_v5 = vld [vmem:[%s1485_s21 + $0x10] sm:$0xff]  ;;  %497 = vmatpush.msra.mxu1 %v466_v4 }
 0x269   :  { %626 = vmatpush.msrb.mxu0 %v601_v63 }
 0x26a   :  { %498 = vmatpush.msra.mxu1 %v465_v6 }
 0x26b   :  { %627 = vmatpush.msrb.mxu0 %v600_v1 }
 0x26c   :  { %499 = vmatpush.msra.mxu1 %v464_v8 }
 0x26d   :  { %628 = vmatpush.msrb.mxu0 %v599_v3 }
 0x26f   :  { %629 = vmatpush.msrb.mxu0 %v598_v5 }
 0x271   :  { %630 = vmatpush.msrb.mxu0 %v597_v7 }
 0x273   :  { %631 = vmatpush.msrb.mxu0 %v596_v9 }
 0x2e4   :  { %v541_v39 = vpop.f32.mrf.mxu2 }
 0x2e5   :  { %v542_v40 = vadd.f32 %v654_v34, %v541_v39 }
 0x2e7   :  { %v545_v43 = vmin.f32 %v542_v40, 0.0  ;;  %vm544_vm4 = vcmp.gt.f32.partialorder %v542_v40, 0.0 }
 0x2e9   :  { %v546_v45 = vmul.f32 1.442695, %v545_v43 }
 0x2ea   :  { %v409_v46 = vpop.f32.mrf.mxu3 }
 0x2eb   :  { %668 = vpow2.f32 %v546_v45  ;;  %v410_v47 = vadd.f32 %v655_v44, %v409_v46 }
 0x2ed   :  { %v413_v48 = vmin.f32 %v410_v47, 0.0  ;;  %vm412_vm5 = vcmp.gt.f32.partialorder %v410_v47, 0.0 }
 0x2ef   :  { %v414_v49 = vmul.f32 1.442695, %v413_v48 }
 0x2f1   :  { %v669_v50 = vpop.eup %668  ;;  %670 = vpow2.f32 %v414_v49 }
 0x2f2   :  { %v649_v51 = vadd.f32 -1.0, %v669_v50 }
 0x2f4   :  { %v549_v52 = vsel %vm544_vm4, %v542_v40, %v649_v51 }
 0x2f5   :  { %586 = vmatmul.f32.vlgmr.msra.gmra.mxu3 %v549_v52 }
 0x2f7   :  { %v671_v53 = vpop.eup %670 }
 0x2f8   :  { %v647_v54 = vadd.f32 -1.0, %v671_v53 }
 0x2fa   :  { %v417_v55 = vsel %vm412_vm5, %v410_v47, %v647_v54 }
 0x2fb   :  { %454 = vmatmul.f32.vlgmr.msra.gmra.mxu0 %v417_v55 }
 0x378   :  { %v455_v12 = vpop.f32.mrf.mxu0  ;;  %v587_v13 = vpop.f32.mrf.mxu3 }
 0x379   :  { %v456_v14 = vadd.f32 %v656_v10, %v455_v12  ;;  %v588_v15 = vadd.f32 %v657_v11, %v587_v13 }
 0x37b   :  { %v459_v16 = vmin.f32 %v456_v14, 0.0  ;;  %v591_v17 = vmin.f32 %v588_v15, 0.0  ;;  %vm458_vm6 = vcmp.gt.f32.partialorder %v456_v14, 0.0  ;;  %vm590_vm7 = vcmp.gt.f32.partialorder %v588_v15, 0.0 }
 0x37d   :  { %v460_v18 = vmul.f32 1.442695, %v459_v16  ;;  %v592_v19 = vmul.f32 1.442695, %v591_v17 }
 0x37f   :  { %672 = vpow2.f32 %v460_v18 }
 0x380   :  { %674 = vpow2.f32 %v592_v19 }
 0x385   :  { %v673_v20 = vpop.eup %672 }
 0x386   :  { %v675_v21 = vpop.eup %674  ;;  %v648_v22 = vadd.f32 -1.0, %v673_v20 }
 0x387   :  { %v650_v23 = vadd.f32 -1.0, %v675_v21 }
 0x388   :  { %v463_v24 = vsel %vm458_vm6, %v456_v14, %v648_v22 }
 0x389   :  { %500 = vmatmul.f32.vlgmr.msra.gmra.mxu1 %v463_v24  ;;  %v595_v25 = vsel %vm590_vm7, %v588_v15, %v650_v23 }
 0x38a   :  { %632 = vmatmul.f32.vlgmr.msrb.gmra.mxu0 %v595_v25 }
 0x406   :  { %v501_v28 = vpop.f32.mrf.mxu1 }
 0x407   :  { %v502_v29 = vadd.f32 %v658_v26, %v501_v28  ;;  %v633_v30 = vpop.f32.mrf.mxu0 }
 0x408   :  { %v634_v31 = vadd.f32 %v659_v27, %v633_v30 }
 0x409   :  { %636 = vst [vmem:[%s1477_s23] sm:$0xff] %v502_v29 }
 0x40a   :  { %637 = vst [vmem:[%s1477_s23 + $0x8] sm:$0xff] %v634_v31 }

</bundles_post_ra>
